<compile_context>
chip_gen: v7x
topology: tpu7x:2x2x1
jax: 0.10.0
libtpu: 0.0.40
codegen_flags: <defaults>
</compile_context>

<pallas_src>
import functools

import jax
import jax.numpy as jnp
from jax import lax
from jax.experimental import pallas as pl
from jax.experimental.pallas import tpu as pltpu


def _round_up(x, m):
    return (x + m - 1) // m * m


def lstm_fc_kernel(x_ref, wih_ref, whh_ref, b_ref, wfc_ref, bfc_ref,
                   out_ref, h_sc, c_sc, xw_sc, *, hidden_pad, block_t, batch_pad):
    """One grid step == one chunk of `block_t` LSTM timesteps.

    x_ref   : (block_t, Bp, F) f32   input chunk
    wih_ref : (F, 4*Hp) f32          input->gates weights (reordered [i,f,o,g], padded)
    whh_ref : (Hp, 4*Hp) f32         hidden->gates weights (reordered, padded)
    b_ref   : (1, 4*Hp) f32          bias_ih + bias_hh (reordered, padded)
    wfc_ref : (1, Hp) f32            fc weight (padded with zeros)
    bfc_ref : (1, 1) f32             fc bias
    out_ref : (Bp, block_t) f32      lane-dense output slab (time on lanes)
    h_sc,c_sc: (Bp, Hp) f32          recurrent state, persists across grid steps
    xw_sc   : (block_t*Bp, 4*Hp) f32 staging for the hoisted input projection
    """
    Hp = hidden_pad
    TB = block_t
    Bp = batch_pad
    F = x_ref.shape[2]

    @pl.when(pl.program_id(0) == 0)
    def _():
        h_sc[...] = jnp.zeros_like(h_sc)
        c_sc[...] = jnp.zeros_like(c_sc)

    # Hoisted input projection for the whole time chunk: one big-M MXU matmul with the
    # fused bias, written straight to VMEM scratch (bounds live ranges in vregs).
    x_flat = x_ref[...].reshape(TB * Bp, F)
    xw_sc[...] = jnp.dot(x_flat, wih_ref[...],
                         preferred_element_type=jnp.float32) + b_ref[...]

    h = h_sc[...]                      # (Bp, Hp) f32
    c = c_sc[...]                      # (Bp, Hp) f32
    w_fc = wfc_ref[...]                # (1, Hp)  f32
    lane_t = lax.broadcasted_iota(jnp.int32, (1, TB), 1)

    # Lane-dense result accumulator: (Bp, block_t), time on the lane axis.
    y_acc = jnp.zeros((Bp, TB), jnp.float32)

    # Statically unrolled recurrence: only h @ W_hh (+ precomputed xw slice) is on the
    # serial path; the fc reduce / select are cheap VPU/XLU filler per step.
    for t in range(TB):
        gates = xw_sc[t * Bp:(t + 1) * Bp, :] + jnp.dot(
            h, whh_ref[...], preferred_element_type=jnp.float32)      # (Bp, 4*Hp)
        # Gate order [i, f, o, g]: one contiguous full-width sigmoid + one tanh;
        # all slices land on 128-lane boundaries (free view selects).
        sig = jax.nn.sigmoid(gates[:, :3 * Hp])
        i_g = sig[:, 0 * Hp:1 * Hp]
        f_g = sig[:, 1 * Hp:2 * Hp]
        o_g = sig[:, 2 * Hp:3 * Hp]
        g_g = jnp.tanh(gates[:, 3 * Hp:])
        c = f_g * c + i_g * g_g
        h = o_g * jnp.tanh(c)
        # fc head per step (linear activation == identity): VPU multiply + lane reduce,
        # deposited into lane column t of the accumulator (no narrow masked stores).
        y_t = jnp.sum(h * w_fc, axis=-1, keepdims=True)               # (Bp, 1)
        y_acc = jnp.where(lane_t == t, y_t, y_acc)

    h_sc[...] = h
    c_sc[...] = c
    out_ref[...] = y_acc + bfc_ref[...]      # single dense (Bp, block_t) store


def rolling_regressor_lstm(x, params, hidden_size, *, max_block_t=128):
    """x: (T, B, F) float32 -> (T, B) float32 (matches output.squeeze(-1))."""
    T, B, F = x.shape
    Hp = params["wfc"].shape[1]                       # padded hidden size (mult of 128)

    Bp = max(8, _round_up(B, 8))                      # sublane-pad the batch
    if T <= max_block_t:
        block_t, Tp = T, T                            # single chunk; full-extent blocks
    else:
        block_t = max_block_t                         # 128 -> lane-dense output blocks
        Tp = _round_up(T, block_t)

    if (Tp, Bp) != (T, B):
        xp = jnp.zeros((Tp, Bp, F), x.dtype).at[:T, :B].set(x)
    else:
        xp = x

    kernel = functools.partial(lstm_fc_kernel, hidden_pad=Hp,
                               block_t=block_t, batch_pad=Bp)

    out = pl.pallas_call(
        kernel,
        out_shape=jax.ShapeDtypeStruct((Bp, Tp), jnp.float32),
        grid_spec=pltpu.PrefetchScalarGridSpec(
            num_scalar_prefetch=0,
            grid=(Tp // block_t,),
            in_specs=[
                pl.BlockSpec((block_t, Bp, F), lambda i: (i, 0, 0)),   # x time chunk
                pl.BlockSpec((F, 4 * Hp), lambda i: (0, 0)),           # W_ih (resident)
                pl.BlockSpec((Hp, 4 * Hp), lambda i: (0, 0)),          # W_hh (resident)
                pl.BlockSpec((1, 4 * Hp), lambda i: (0, 0)),           # fused bias
                pl.BlockSpec((1, Hp), lambda i: (0, 0)),               # fc weight
                pl.BlockSpec((1, 1), lambda i: (0, 0)),                # fc bias
            ],
            out_specs=pl.BlockSpec((Bp, block_t), lambda i: (0, i)),   # lane-dense
            scratch_shapes=[
                pltpu.VMEM((Bp, Hp), jnp.float32),                     # h state
                pltpu.VMEM((Bp, Hp), jnp.float32),                     # c state
                pltpu.VMEM((block_t * Bp, 4 * Hp), jnp.float32),       # hoisted x@W_ih
            ],
        ),
        compiler_params=pltpu.CompilerParams(
            dimension_semantics=("arbitrary",),        # time is a true recurrence
        ),
    )(xp, params["wih"], params["whh"], params["b"], params["wfc"], params["bfc"])

    return out[:B, :T].T                               # (T, B)


def init_raw_params(key, n_features, hidden_size):
    """PyTorch-layout params: U(-1/sqrt(H), 1/sqrt(H)), gate order [i, f, g, o]."""
    H = hidden_size
    k = 1.0 / jnp.sqrt(jnp.float32(H))
    ks = jax.random.split(key, 6)
    return {
        "w_ih": jax.random.uniform(ks[0], (4 * H, n_features), jnp.float32, -k, k),
        "w_hh": jax.random.uniform(ks[1], (4 * H, H), jnp.float32, -k, k),
        "b_ih": jax.random.uniform(ks[2], (4 * H,), jnp.float32, -k, k),
        "b_hh": jax.random.uniform(ks[3], (4 * H,), jnp.float32, -k, k),
        "w_fc": jax.random.uniform(ks[4], (1, H), jnp.float32, -k, k),
        "b_fc": jax.random.uniform(ks[5], (1,), jnp.float32, -k, k),
    }


def prepare_params(raw, hidden_size):
    """PyTorch layout -> kernel layout: transpose, reorder gates [i,f,g,o]->[i,f,o,g],
    zero-pad each gate block and the hidden dim to a 128-lane multiple.  Zero padding
    keeps padded h/c columns exactly 0 through the recurrence (i/f/o_pad=0.5, g_pad=0)."""
    H = hidden_size
    Hp = _round_up(H, 128)

    def reorder_pad_cols(w_t):                         # (K, 4H) -> (K, 4*Hp)
        gates = [w_t[:, g * H:(g + 1) * H] for g in range(4)]
        gates = [gates[0], gates[1], gates[3], gates[2]]          # i, f, o, g
        gates = [jnp.pad(g_, ((0, 0), (0, Hp - H))) for g_ in gates]
        return jnp.concatenate(gates, axis=1)

    wih = reorder_pad_cols(raw["w_ih"].T)              # (F, 4*Hp)
    whh = reorder_pad_cols(raw["w_hh"].T)              # (H, 4*Hp)
    whh = jnp.pad(whh, ((0, Hp - H), (0, 0)))          # (Hp, 4*Hp), zero rows for h-pad

    b = raw["b_ih"] + raw["b_hh"]                      # (4H,)
    bg = [b[g * H:(g + 1) * H] for g in range(4)]
    bg = [bg[0], bg[1], bg[3], bg[2]]                  # i, f, o, g
    bias = jnp.concatenate([jnp.pad(v, (0, Hp - H)) for v in bg])[None, :]  # (1, 4*Hp)

    wfc = jnp.pad(raw["w_fc"], ((0, 0), (0, Hp - H)))  # (1, Hp)
    bfc = raw["b_fc"][None, :]                         # (1, 1)
    return {"wih": wih, "whh": whh, "b": bias, "wfc": wfc, "bfc": bfc}


def reference_forward(x, raw, hidden_size):
    """Pure-JAX float32 reference matching torch nn.LSTM + Linear semantics."""
    H = hidden_size
    wih_t, whh_t = raw["w_ih"].T, raw["w_hh"].T
    b = (raw["b_ih"] + raw["b_hh"])[None, :]
    wfc, bfc = raw["w_fc"], raw["b_fc"]
    hi = lax.Precision.HIGHEST

    def step(carry, x_t):
        h, c = carry
        gates = (jnp.dot(x_t, wih_t, precision=hi)
                 + jnp.dot(h, whh_t, precision=hi) + b)
        i = jax.nn.sigmoid(gates[:, 0 * H:1 * H])
        f = jax.nn.sigmoid(gates[:, 1 * H:2 * H])
        g = jnp.tanh(gates[:, 2 * H:3 * H])
        o = jax.nn.sigmoid(gates[:, 3 * H:4 * H])
        c = f * c + i * g
        h = o * jnp.tanh(c)
        y = jnp.dot(h, wfc.T, precision=hi)[:, 0] + bfc[0]
        return (h, c), y

    B = x.shape[1]
    h0 = jnp.zeros((B, H), jnp.float32)
    c0 = jnp.zeros((B, H), jnp.float32)
    _, ys = lax.scan(step, (h0, c0), x)
    return ys                                          # (T, B)


if __name__ == "__main__":
    seq_len, batch, n_features, hidden_size = 8, 4, 8, 32

    key = jax.random.PRNGKey(0)
    k_x, k_p = jax.random.split(key)
    x = jax.random.normal(k_x, (seq_len, batch, n_features), jnp.float32)
    raw = init_raw_params(k_p, n_features, hidden_size)
    params = prepare_params(raw, hidden_size)

    out = rolling_regressor_lstm(x, params, hidden_size)
    out = jax.block_until_ready(out)

    ref = reference_forward(x, raw, hidden_size)
    assert out.shape == (seq_len, batch)
    err = float(jnp.max(jnp.abs(out - ref)))
    assert jnp.allclose(out, ref, atol=2e-3, rtol=2e-3), f"mismatch vs reference: {err}"

    print("KERNEL_OK")
</pallas_src>

<mosaic_0001>
module attributes {stable_mosaic.version = 11 : i64} {
  func.func @lstm_fc_kernel(%arg0: i32, %arg1: memref<8x8x8xf32, #tpu.memory_space<vmem>>, %arg2: memref<8x512xf32, #tpu.memory_space<vmem>>, %arg3: memref<128x512xf32, #tpu.memory_space<vmem>>, %arg4: memref<1x512xf32, #tpu.memory_space<vmem>>, %arg5: memref<1x128xf32, #tpu.memory_space<vmem>>, %arg6: memref<1x1xf32, #tpu.memory_space<vmem>>, %arg7: memref<8x8xf32, #tpu.memory_space<vmem>>, %arg8: memref<8x128xf32, #tpu.memory_space<vmem>>, %arg9: memref<8x128xf32, #tpu.memory_space<vmem>>, %arg10: memref<64x512xf32, #tpu.memory_space<vmem>>) attributes {dimension_semantics = [#tpu.dimension_semantics<arbitrary>], iteration_bounds = array<i64: 1>, scalar_prefetch = 0 : i64, scratch_operands = 3 : i64, tpu.core_type = #tpu.core_type<tc>, window_params = [{transform_indices = @transform_0, window_bounds = array<i64: 8, 8, 8>}, {pipeline_mode = #tpu.pipeline_mode<synchronous>, transform_indices = @transform_1, window_bounds = array<i64: 8, 512>}, {pipeline_mode = #tpu.pipeline_mode<synchronous>, transform_indices = @transform_2, window_bounds = array<i64: 128, 512>}, {pipeline_mode = #tpu.pipeline_mode<synchronous>, transform_indices = @transform_3, window_bounds = array<i64: 1, 512>}, {pipeline_mode = #tpu.pipeline_mode<synchronous>, transform_indices = @transform_4, window_bounds = array<i64: 1, 128>}, {pipeline_mode = #tpu.pipeline_mode<synchronous>, transform_indices = @transform_5, window_bounds = array<i64: 1, 1>}, {transform_indices = @transform_6, window_bounds = array<i64: 8, 8>}]} {
    %c0_i32 = arith.constant 0 : i32
    %0 = arith.cmpi eq, %arg0, %c0_i32 : i32
    %1 = arith.extui %0 : i1 to i32
    %c0_i32_0 = arith.constant 0 : i32
    %2 = arith.cmpi ne, %1, %c0_i32_0 : i32
    scf.if %2 {
      %cst_74 = arith.constant 0.000000e+00 : f32
      %270 = vector.broadcast %cst_74 : f32 to vector<8x128xf32>
      %c0_75 = arith.constant 0 : index
      %c0_76 = arith.constant 0 : index
      %271 = vector.load %arg8[%c0_75, %c0_76] : memref<8x128xf32, #tpu.memory_space<vmem>>, vector<8x128xf32>
      tpu.vector_store %arg8[%c0_75, %c0_76], %270 {strides = array<i32>} : memref<8x128xf32, #tpu.memory_space<vmem>>, vector<8x128xf32>,
      %cst_77 = arith.constant 0.000000e+00 : f32
      %272 = vector.broadcast %cst_77 : f32 to vector<8x128xf32>
      %c0_78 = arith.constant 0 : index
      %c0_79 = arith.constant 0 : index
      %273 = vector.load %arg9[%c0_78, %c0_79] : memref<8x128xf32, #tpu.memory_space<vmem>>, vector<8x128xf32>
      tpu.vector_store %arg9[%c0_78, %c0_79], %272 {strides = array<i32>} : memref<8x128xf32, #tpu.memory_space<vmem>>, vector<8x128xf32>,
    } else {
    }
    %c0 = arith.constant 0 : index
    %c0_1 = arith.constant 0 : index
    %c0_2 = arith.constant 0 : index
    %3 = vector.load %arg1[%c0, %c0_1, %c0_2] : memref<8x8x8xf32, #tpu.memory_space<vmem>>, vector<8x8x8xf32>
    %4 = vector.shape_cast %3 : vector<8x8x8xf32> to vector<64x8xf32>
    %c0_3 = arith.constant 0 : index
    %c0_4 = arith.constant 0 : index
    %5 = vector.load %arg2[%c0_3, %c0_4] : memref<8x512xf32, #tpu.memory_space<vmem>>, vector<8x512xf32>
    %cst = arith.constant dense<0.000000e+00> : vector<64x512xf32>
    %6 = tpu.matmul %4, %5, %cst {dimension_numbers = #tpu.dot_dimension_numbers<[1], [0], [0], [1], [0, 0, 1, 1], [], []>} : vector<64x8xf32>, vector<8x512xf32>, vector<64x512xf32> -> vector<64x512xf32>
    %c0_5 = arith.constant 0 : index
    %c0_6 = arith.constant 0 : index
    %7 = vector.load %arg4[%c0_5, %c0_6] : memref<1x512xf32, #tpu.memory_space<vmem>>, vector<1x512xf32>
    %8 = vector.broadcast %7 : vector<1x512xf32> to vector<64x512xf32>
    %9 = arith.addf %6, %8 : vector<64x512xf32>
    %c0_7 = arith.constant 0 : index
    %c0_8 = arith.constant 0 : index
    %10 = vector.load %arg10[%c0_7, %c0_8] : memref<64x512xf32, #tpu.memory_space<vmem>>, vector<64x512xf32>
    tpu.vector_store %arg10[%c0_7, %c0_8], %9 {strides = array<i32>} : memref<64x512xf32, #tpu.memory_space<vmem>>, vector<64x512xf32>,
    %c0_9 = arith.constant 0 : index
    %c0_10 = arith.constant 0 : index
    %11 = vector.load %arg8[%c0_9, %c0_10] : memref<8x128xf32, #tpu.memory_space<vmem>>, vector<8x128xf32>
    %c0_11 = arith.constant 0 : index
    %c0_12 = arith.constant 0 : index
    %12 = vector.load %arg9[%c0_11, %c0_12] : memref<8x128xf32, #tpu.memory_space<vmem>>, vector<8x128xf32>
    %c0_13 = arith.constant 0 : index
    %c0_14 = arith.constant 0 : index
    %13 = vector.load %arg5[%c0_13, %c0_14] : memref<1x128xf32, #tpu.memory_space<vmem>>, vector<1x128xf32>
    %14 = tpu.iota {dimensions = array<i32: 1>} : vector<1x8xi32>
    %cst_15 = arith.constant 0.000000e+00 : f32
    %15 = vector.broadcast %cst_15 : f32 to vector<8x8xf32>
    %c0_16 = arith.constant 0 : index
    %c0_17 = arith.constant 0 : index
    %16 = vector.load %arg10[%c0_16, %c0_17] : memref<64x512xf32, #tpu.memory_space<vmem>>, vector<8x512xf32>
    %c0_18 = arith.constant 0 : index
    %c0_19 = arith.constant 0 : index
    %17 = vector.load %arg3[%c0_18, %c0_19] : memref<128x512xf32, #tpu.memory_space<vmem>>, vector<128x512xf32>
    %cst_20 = arith.constant dense<0.000000e+00> : vector<8x512xf32>
    %18 = tpu.matmul %11, %17, %cst_20 {dimension_numbers = #tpu.dot_dimension_numbers<[1], [0], [0], [1], [0, 0, 1, 1], [], []>} : vector<8x128xf32>, vector<128x512xf32>, vector<8x512xf32> -> vector<8x512xf32>
    %19 = arith.addf %16, %18 : vector<8x512xf32>
    %20 = vector.extract_strided_slice %19 {offsets = [0, 0], sizes = [8, 384], strides = [1, 1]} : vector<8x512xf32> to vector<8x384xf32>
    %21 = arith.negf %20 : vector<8x384xf32>
    %22 = math.exp %21 : vector<8x384xf32>
    %cst_21 = arith.constant 1.000000e+00 : f32
    %23 = vector.broadcast %cst_21 : f32 to vector<8x384xf32>
    %24 = arith.addf %23, %22 : vector<8x384xf32>
    %25 = arith.divf %23, %24 : vector<8x384xf32>
    %26 = vector.extract_strided_slice %25 {offsets = [0, 0], sizes = [8, 128], strides = [1, 1]} : vector<8x384xf32> to vector<8x128xf32>
    %27 = vector.extract_strided_slice %25 {offsets = [0, 128], sizes = [8, 128], strides = [1, 1]} : vector<8x384xf32> to vector<8x128xf32>
    %28 = vector.extract_strided_slice %25 {offsets = [0, 256], sizes = [8, 128], strides = [1, 1]} : vector<8x384xf32> to vector<8x128xf32>
    %29 = vector.extract_strided_slice %19 {offsets = [0, 384], sizes = [8, 128], strides = [1, 1]} : vector<8x512xf32> to vector<8x128xf32>
    %30 = math.tanh %29 : vector<8x128xf32>
    %31 = arith.mulf %27, %12 : vector<8x128xf32>
    %32 = arith.mulf %26, %30 : vector<8x128xf32>
    %33 = arith.addf %31, %32 : vector<8x128xf32>
    %34 = math.tanh %33 : vector<8x128xf32>
    %35 = arith.mulf %28, %34 : vector<8x128xf32>
    %36 = vector.broadcast %13 : vector<1x128xf32> to vector<8x128xf32>
    %37 = arith.mulf %35, %36 : vector<8x128xf32>
    %cst_22 = arith.constant dense<0.000000e+00> : vector<8xf32>
    %38 = vector.multi_reduction <add>, %37, %cst_22 [1] : vector<8x128xf32> to vector<8xf32>
    %39 = vector.shape_cast %38 : vector<8xf32> to vector<8x1xf32>
    %c0_i32_23 = arith.constant 0 : i32
    %40 = vector.broadcast %c0_i32_23 : i32 to vector<1x8xi32>
    %41 = arith.cmpi eq, %14, %40 : vector<1x8xi32>
    %42 = vector.shape_cast %41 : vector<1x8xi1> to vector<1x8xi1>
    %43 = vector.broadcast %42 : vector<1x8xi1> to vector<8x8xi1>
    %44 = vector.shape_cast %39 : vector<8x1xf32> to vector<8x1xf32>
    %45 = vector.broadcast %44 : vector<8x1xf32> to vector<8x8xf32>
    %46 = arith.select %43, %45, %15 : vector<8x8xi1>, vector<8x8xf32>
    %c8 = arith.constant 8 : index
    %c0_24 = arith.constant 0 : index
    %47 = vector.load %arg10[%c8, %c0_24] : memref<64x512xf32, #tpu.memory_space<vmem>>, vector<8x512xf32>
    %c0_25 = arith.constant 0 : index
    %c0_26 = arith.constant 0 : index
    %48 = vector.load %arg3[%c0_25, %c0_26] : memref<128x512xf32, #tpu.memory_space<vmem>>, vector<128x512xf32>
    %cst_27 = arith.constant dense<0.000000e+00> : vector<8x512xf32>
    %49 = tpu.matmul %35, %48, %cst_27 {dimension_numbers = #tpu.dot_dimension_numbers<[1], [0], [0], [1], [0, 0, 1, 1], [], []>} : vector<8x128xf32>, vector<128x512xf32>, vector<8x512xf32> -> vector<8x512xf32>
    %50 = arith.addf %47, %49 : vector<8x512xf32>
    %51 = vector.extract_strided_slice %50 {offsets = [0, 0], sizes = [8, 384], strides = [1, 1]} : vector<8x512xf32> to vector<8x384xf32>
    %52 = arith.negf %51 : vector<8x384xf32>
    %53 = math.exp %52 : vector<8x384xf32>
    %cst_28 = arith.constant 1.000000e+00 : f32
    %54 = vector.broadcast %cst_28 : f32 to vector<8x384xf32>
    %55 = arith.addf %54, %53 : vector<8x384xf32>
    %56 = arith.divf %54, %55 : vector<8x384xf32>
    %57 = vector.extract_strided_slice %56 {offsets = [0, 0], sizes = [8, 128], strides = [1, 1]} : vector<8x384xf32> to vector<8x128xf32>
    %58 = vector.extract_strided_slice %56 {offsets = [0, 128], sizes = [8, 128], strides = [1, 1]} : vector<8x384xf32> to vector<8x128xf32>
    %59 = vector.extract_strided_slice %56 {offsets = [0, 256], sizes = [8, 128], strides = [1, 1]} : vector<8x384xf32> to vector<8x128xf32>
    %60 = vector.extract_strided_slice %50 {offsets = [0, 384], sizes = [8, 128], strides = [1, 1]} : vector<8x512xf32> to vector<8x128xf32>
    %61 = math.tanh %60 : vector<8x128xf32>
    %62 = arith.mulf %58, %33 : vector<8x128xf32>
    %63 = arith.mulf %57, %61 : vector<8x128xf32>
    %64 = arith.addf %62, %63 : vector<8x128xf32>
    %65 = math.tanh %64 : vector<8x128xf32>
    %66 = arith.mulf %59, %65 : vector<8x128xf32>
    %67 = vector.broadcast %13 : vector<1x128xf32> to vector<8x128xf32>
    %68 = arith.mulf %66, %67 : vector<8x128xf32>
    %cst_29 = arith.constant dense<0.000000e+00> : vector<8xf32>
    %69 = vector.multi_reduction <add>, %68, %cst_29 [1] : vector<8x128xf32> to vector<8xf32>
    %70 = vector.shape_cast %69 : vector<8xf32> to vector<8x1xf32>
    %c1_i32 = arith.constant 1 : i32
    %71 = vector.broadcast %c1_i32 : i32 to vector<1x8xi32>
    %72 = arith.cmpi eq, %14, %71 : vector<1x8xi32>
    %73 = vector.shape_cast %72 : vector<1x8xi1> to vector<1x8xi1>
    %74 = vector.broadcast %73 : vector<1x8xi1> to vector<8x8xi1>
    %75 = vector.shape_cast %70 : vector<8x1xf32> to vector<8x1xf32>
    %76 = vector.broadcast %75 : vector<8x1xf32> to vector<8x8xf32>
    %77 = arith.select %74, %76, %46 : vector<8x8xi1>, vector<8x8xf32>
    %c16 = arith.constant 16 : index
    %c0_30 = arith.constant 0 : index
    %78 = vector.load %arg10[%c16, %c0_30] : memref<64x512xf32, #tpu.memory_space<vmem>>, vector<8x512xf32>
    %c0_31 = arith.constant 0 : index
    %c0_32 = arith.constant 0 : index
    %79 = vector.load %arg3[%c0_31, %c0_32] : memref<128x512xf32, #tpu.memory_space<vmem>>, vector<128x512xf32>
    %cst_33 = arith.constant dense<0.000000e+00> : vector<8x512xf32>
    %80 = tpu.matmul %66, %79, %cst_33 {dimension_numbers = #tpu.dot_dimension_numbers<[1], [0], [0], [1], [0, 0, 1, 1], [], []>} : vector<8x128xf32>, vector<128x512xf32>, vector<8x512xf32> -> vector<8x512xf32>
    %81 = arith.addf %78, %80 : vector<8x512xf32>
    %82 = vector.extract_strided_slice %81 {offsets = [0, 0], sizes = [8, 384], strides = [1, 1]} : vector<8x512xf32> to vector<8x384xf32>
    %83 = arith.negf %82 : vector<8x384xf32>
    %84 = math.exp %83 : vector<8x384xf32>
    %cst_34 = arith.constant 1.000000e+00 : f32
    %85 = vector.broadcast %cst_34 : f32 to vector<8x384xf32>
    %86 = arith.addf %85, %84 : vector<8x384xf32>
    %87 = arith.divf %85, %86 : vector<8x384xf32>
    %88 = vector.extract_strided_slice %87 {offsets = [0, 0], sizes = [8, 128], strides = [1, 1]} : vector<8x384xf32> to vector<8x128xf32>
    %89 = vector.extract_strided_slice %87 {offsets = [0, 128], sizes = [8, 128], strides = [1, 1]} : vector<8x384xf32> to vector<8x128xf32>
    %90 = vector.extract_strided_slice %87 {offsets = [0, 256], sizes = [8, 128], strides = [1, 1]} : vector<8x384xf32> to vector<8x128xf32>
    %91 = vector.extract_strided_slice %81 {offsets = [0, 384], sizes = [8, 128], strides = [1, 1]} : vector<8x512xf32> to vector<8x128xf32>
    %92 = math.tanh %91 : vector<8x128xf32>
    %93 = arith.mulf %89, %64 : vector<8x128xf32>
    %94 = arith.mulf %88, %92 : vector<8x128xf32>
    %95 = arith.addf %93, %94 : vector<8x128xf32>
    %96 = math.tanh %95 : vector<8x128xf32>
    %97 = arith.mulf %90, %96 : vector<8x128xf32>
    %98 = vector.broadcast %13 : vector<1x128xf32> to vector<8x128xf32>
    %99 = arith.mulf %97, %98 : vector<8x128xf32>
    %cst_35 = arith.constant dense<0.000000e+00> : vector<8xf32>
    %100 = vector.multi_reduction <add>, %99, %cst_35 [1] : vector<8x128xf32> to vector<8xf32>
    %101 = vector.shape_cast %100 : vector<8xf32> to vector<8x1xf32>
    %c2_i32 = arith.constant 2 : i32
    %102 = vector.broadcast %c2_i32 : i32 to vector<1x8xi32>
    %103 = arith.cmpi eq, %14, %102 : vector<1x8xi32>
    %104 = vector.shape_cast %103 : vector<1x8xi1> to vector<1x8xi1>
    %105 = vector.broadcast %104 : vector<1x8xi1> to vector<8x8xi1>
    %106 = vector.shape_cast %101 : vector<8x1xf32> to vector<8x1xf32>
    %107 = vector.broadcast %106 : vector<8x1xf32> to vector<8x8xf32>
    %108 = arith.select %105, %107, %77 : vector<8x8xi1>, vector<8x8xf32>
    %c24 = arith.constant 24 : index
    %c0_36 = arith.constant 0 : index
    %109 = vector.load %arg10[%c24, %c0_36] : memref<64x512xf32, #tpu.memory_space<vmem>>, vector<8x512xf32>
    %c0_37 = arith.constant 0 : index
    %c0_38 = arith.constant 0 : index
    %110 = vector.load %arg3[%c0_37, %c0_38] : memref<128x512xf32, #tpu.memory_space<vmem>>, vector<128x512xf32>
    %cst_39 = arith.constant dense<0.000000e+00> : vector<8x512xf32>
    %111 = tpu.matmul %97, %110, %cst_39 {dimension_numbers = #tpu.dot_dimension_numbers<[1], [0], [0], [1], [0, 0, 1, 1], [], []>} : vector<8x128xf32>, vector<128x512xf32>, vector<8x512xf32> -> vector<8x512xf32>
    %112 = arith.addf %109, %111 : vector<8x512xf32>
    %113 = vector.extract_strided_slice %112 {offsets = [0, 0], sizes = [8, 384], strides = [1, 1]} : vector<8x512xf32> to vector<8x384xf32>
    %114 = arith.negf %113 : vector<8x384xf32>
    %115 = math.exp %114 : vector<8x384xf32>
    %cst_40 = arith.constant 1.000000e+00 : f32
    %116 = vector.broadcast %cst_40 : f32 to vector<8x384xf32>
    %117 = arith.addf %116, %115 : vector<8x384xf32>
    %118 = arith.divf %116, %117 : vector<8x384xf32>
    %119 = vector.extract_strided_slice %118 {offsets = [0, 0], sizes = [8, 128], strides = [1, 1]} : vector<8x384xf32> to vector<8x128xf32>
    %120 = vector.extract_strided_slice %118 {offsets = [0, 128], sizes = [8, 128], strides = [1, 1]} : vector<8x384xf32> to vector<8x128xf32>
    %121 = vector.extract_strided_slice %118 {offsets = [0, 256], sizes = [8, 128], strides = [1, 1]} : vector<8x384xf32> to vector<8x128xf32>
    %122 = vector.extract_strided_slice %112 {offsets = [0, 384], sizes = [8, 128], strides = [1, 1]} : vector<8x512xf32> to vector<8x128xf32>
    %123 = math.tanh %122 : vector<8x128xf32>
    %124 = arith.mulf %120, %95 : vector<8x128xf32>
    %125 = arith.mulf %119, %123 : vector<8x128xf32>
    %126 = arith.addf %124, %125 : vector<8x128xf32>
    %127 = math.tanh %126 : vector<8x128xf32>
    %128 = arith.mulf %121, %127 : vector<8x128xf32>
    %129 = vector.broadcast %13 : vector<1x128xf32> to vector<8x128xf32>
    %130 = arith.mulf %128, %129 : vector<8x128xf32>
    %cst_41 = arith.constant dense<0.000000e+00> : vector<8xf32>
    %131 = vector.multi_reduction <add>, %130, %cst_41 [1] : vector<8x128xf32> to vector<8xf32>
    %132 = vector.shape_cast %131 : vector<8xf32> to vector<8x1xf32>
    %c3_i32 = arith.constant 3 : i32
    %133 = vector.broadcast %c3_i32 : i32 to vector<1x8xi32>
    %134 = arith.cmpi eq, %14, %133 : vector<1x8xi32>
    %135 = vector.shape_cast %134 : vector<1x8xi1> to vector<1x8xi1>
    %136 = vector.broadcast %135 : vector<1x8xi1> to vector<8x8xi1>
    %137 = vector.shape_cast %132 : vector<8x1xf32> to vector<8x1xf32>
    %138 = vector.broadcast %137 : vector<8x1xf32> to vector<8x8xf32>
    %139 = arith.select %136, %138, %108 : vector<8x8xi1>, vector<8x8xf32>
    %c32 = arith.constant 32 : index
    %c0_42 = arith.constant 0 : index
    %140 = vector.load %arg10[%c32, %c0_42] : memref<64x512xf32, #tpu.memory_space<vmem>>, vector<8x512xf32>
    %c0_43 = arith.constant 0 : index
    %c0_44 = arith.constant 0 : index
    %141 = vector.load %arg3[%c0_43, %c0_44] : memref<128x512xf32, #tpu.memory_space<vmem>>, vector<128x512xf32>
    %cst_45 = arith.constant dense<0.000000e+00> : vector<8x512xf32>
    %142 = tpu.matmul %128, %141, %cst_45 {dimension_numbers = #tpu.dot_dimension_numbers<[1], [0], [0], [1], [0, 0, 1, 1], [], []>} : vector<8x128xf32>, vector<128x512xf32>, vector<8x512xf32> -> vector<8x512xf32>
    %143 = arith.addf %140, %142 : vector<8x512xf32>
    %144 = vector.extract_strided_slice %143 {offsets = [0, 0], sizes = [8, 384], strides = [1, 1]} : vector<8x512xf32> to vector<8x384xf32>
    %145 = arith.negf %144 : vector<8x384xf32>
    %146 = math.exp %145 : vector<8x384xf32>
    %cst_46 = arith.constant 1.000000e+00 : f32
    %147 = vector.broadcast %cst_46 : f32 to vector<8x384xf32>
    %148 = arith.addf %147, %146 : vector<8x384xf32>
    %149 = arith.divf %147, %148 : vector<8x384xf32>
    %150 = vector.extract_strided_slice %149 {offsets = [0, 0], sizes = [8, 128], strides = [1, 1]} : vector<8x384xf32> to vector<8x128xf32>
    %151 = vector.extract_strided_slice %149 {offsets = [0, 128], sizes = [8, 128], strides = [1, 1]} : vector<8x384xf32> to vector<8x128xf32>
    %152 = vector.extract_strided_slice %149 {offsets = [0, 256], sizes = [8, 128], strides = [1, 1]} : vector<8x384xf32> to vector<8x128xf32>
    %153 = vector.extract_strided_slice %143 {offsets = [0, 384], sizes = [8, 128], strides = [1, 1]} : vector<8x512xf32> to vector<8x128xf32>
    %154 = math.tanh %153 : vector<8x128xf32>
    %155 = arith.mulf %151, %126 : vector<8x128xf32>
    %156 = arith.mulf %150, %154 : vector<8x128xf32>
    %157 = arith.addf %155, %156 : vector<8x128xf32>
    %158 = math.tanh %157 : vector<8x128xf32>
    %159 = arith.mulf %152, %158 : vector<8x128xf32>
    %160 = vector.broadcast %13 : vector<1x128xf32> to vector<8x128xf32>
    %161 = arith.mulf %159, %160 : vector<8x128xf32>
    %cst_47 = arith.constant dense<0.000000e+00> : vector<8xf32>
    %162 = vector.multi_reduction <add>, %161, %cst_47 [1] : vector<8x128xf32> to vector<8xf32>
    %163 = vector.shape_cast %162 : vector<8xf32> to vector<8x1xf32>
    %c4_i32 = arith.constant 4 : i32
    %164 = vector.broadcast %c4_i32 : i32 to vector<1x8xi32>
    %165 = arith.cmpi eq, %14, %164 : vector<1x8xi32>
    %166 = vector.shape_cast %165 : vector<1x8xi1> to vector<1x8xi1>
    %167 = vector.broadcast %166 : vector<1x8xi1> to vector<8x8xi1>
    %168 = vector.shape_cast %163 : vector<8x1xf32> to vector<8x1xf32>
    %169 = vector.broadcast %168 : vector<8x1xf32> to vector<8x8xf32>
    %170 = arith.select %167, %169, %139 : vector<8x8xi1>, vector<8x8xf32>
    %c40 = arith.constant 40 : index
    %c0_48 = arith.constant 0 : index
    %171 = vector.load %arg10[%c40, %c0_48] : memref<64x512xf32, #tpu.memory_space<vmem>>, vector<8x512xf32>
    %c0_49 = arith.constant 0 : index
    %c0_50 = arith.constant 0 : index
    %172 = vector.load %arg3[%c0_49, %c0_50] : memref<128x512xf32, #tpu.memory_space<vmem>>, vector<128x512xf32>
    %cst_51 = arith.constant dense<0.000000e+00> : vector<8x512xf32>
    %173 = tpu.matmul %159, %172, %cst_51 {dimension_numbers = #tpu.dot_dimension_numbers<[1], [0], [0], [1], [0, 0, 1, 1], [], []>} : vector<8x128xf32>, vector<128x512xf32>, vector<8x512xf32> -> vector<8x512xf32>
    %174 = arith.addf %171, %173 : vector<8x512xf32>
    %175 = vector.extract_strided_slice %174 {offsets = [0, 0], sizes = [8, 384], strides = [1, 1]} : vector<8x512xf32> to vector<8x384xf32>
    %176 = arith.negf %175 : vector<8x384xf32>
    %177 = math.exp %176 : vector<8x384xf32>
    %cst_52 = arith.constant 1.000000e+00 : f32
    %178 = vector.broadcast %cst_52 : f32 to vector<8x384xf32>
    %179 = arith.addf %178, %177 : vector<8x384xf32>
    %180 = arith.divf %178, %179 : vector<8x384xf32>
    %181 = vector.extract_strided_slice %180 {offsets = [0, 0], sizes = [8, 128], strides = [1, 1]} : vector<8x384xf32> to vector<8x128xf32>
    %182 = vector.extract_strided_slice %180 {offsets = [0, 128], sizes = [8, 128], strides = [1, 1]} : vector<8x384xf32> to vector<8x128xf32>
    %183 = vector.extract_strided_slice %180 {offsets = [0, 256], sizes = [8, 128], strides = [1, 1]} : vector<8x384xf32> to vector<8x128xf32>
    %184 = vector.extract_strided_slice %174 {offsets = [0, 384], sizes = [8, 128], strides = [1, 1]} : vector<8x512xf32> to vector<8x128xf32>
    %185 = math.tanh %184 : vector<8x128xf32>
    %186 = arith.mulf %182, %157 : vector<8x128xf32>
    %187 = arith.mulf %181, %185 : vector<8x128xf32>
    %188 = arith.addf %186, %187 : vector<8x128xf32>
    %189 = math.tanh %188 : vector<8x128xf32>
    %190 = arith.mulf %183, %189 : vector<8x128xf32>
    %191 = vector.broadcast %13 : vector<1x128xf32> to vector<8x128xf32>
    %192 = arith.mulf %190, %191 : vector<8x128xf32>
    %cst_53 = arith.constant dense<0.000000e+00> : vector<8xf32>
    %193 = vector.multi_reduction <add>, %192, %cst_53 [1] : vector<8x128xf32> to vector<8xf32>
    %194 = vector.shape_cast %193 : vector<8xf32> to vector<8x1xf32>
    %c5_i32 = arith.constant 5 : i32
    %195 = vector.broadcast %c5_i32 : i32 to vector<1x8xi32>
    %196 = arith.cmpi eq, %14, %195 : vector<1x8xi32>
    %197 = vector.shape_cast %196 : vector<1x8xi1> to vector<1x8xi1>
    %198 = vector.broadcast %197 : vector<1x8xi1> to vector<8x8xi1>
    %199 = vector.shape_cast %194 : vector<8x1xf32> to vector<8x1xf32>
    %200 = vector.broadcast %199 : vector<8x1xf32> to vector<8x8xf32>
    %201 = arith.select %198, %200, %170 : vector<8x8xi1>, vector<8x8xf32>
    %c48 = arith.constant 48 : index
    %c0_54 = arith.constant 0 : index
    %202 = vector.load %arg10[%c48, %c0_54] : memref<64x512xf32, #tpu.memory_space<vmem>>, vector<8x512xf32>
    %c0_55 = arith.constant 0 : index
    %c0_56 = arith.constant 0 : index
    %203 = vector.load %arg3[%c0_55, %c0_56] : memref<128x512xf32, #tpu.memory_space<vmem>>, vector<128x512xf32>
    %cst_57 = arith.constant dense<0.000000e+00> : vector<8x512xf32>
    %204 = tpu.matmul %190, %203, %cst_57 {dimension_numbers = #tpu.dot_dimension_numbers<[1], [0], [0], [1], [0, 0, 1, 1], [], []>} : vector<8x128xf32>, vector<128x512xf32>, vector<8x512xf32> -> vector<8x512xf32>
    %205 = arith.addf %202, %204 : vector<8x512xf32>
    %206 = vector.extract_strided_slice %205 {offsets = [0, 0], sizes = [8, 384], strides = [1, 1]} : vector<8x512xf32> to vector<8x384xf32>
    %207 = arith.negf %206 : vector<8x384xf32>
    %208 = math.exp %207 : vector<8x384xf32>
    %cst_58 = arith.constant 1.000000e+00 : f32
    %209 = vector.broadcast %cst_58 : f32 to vector<8x384xf32>
    %210 = arith.addf %209, %208 : vector<8x384xf32>
    %211 = arith.divf %209, %210 : vector<8x384xf32>
    %212 = vector.extract_strided_slice %211 {offsets = [0, 0], sizes = [8, 128], strides = [1, 1]} : vector<8x384xf32> to vector<8x128xf32>
    %213 = vector.extract_strided_slice %211 {offsets = [0, 128], sizes = [8, 128], strides = [1, 1]} : vector<8x384xf32> to vector<8x128xf32>
    %214 = vector.extract_strided_slice %211 {offsets = [0, 256], sizes = [8, 128], strides = [1, 1]} : vector<8x384xf32> to vector<8x128xf32>
    %215 = vector.extract_strided_slice %205 {offsets = [0, 384], sizes = [8, 128], strides = [1, 1]} : vector<8x512xf32> to vector<8x128xf32>
    %216 = math.tanh %215 : vector<8x128xf32>
    %217 = arith.mulf %213, %188 : vector<8x128xf32>
    %218 = arith.mulf %212, %216 : vector<8x128xf32>
    %219 = arith.addf %217, %218 : vector<8x128xf32>
    %220 = math.tanh %219 : vector<8x128xf32>
    %221 = arith.mulf %214, %220 : vector<8x128xf32>
    %222 = vector.broadcast %13 : vector<1x128xf32> to vector<8x128xf32>
    %223 = arith.mulf %221, %222 : vector<8x128xf32>
    %cst_59 = arith.constant dense<0.000000e+00> : vector<8xf32>
    %224 = vector.multi_reduction <add>, %223, %cst_59 [1] : vector<8x128xf32> to vector<8xf32>
    %225 = vector.shape_cast %224 : vector<8xf32> to vector<8x1xf32>
    %c6_i32 = arith.constant 6 : i32
    %226 = vector.broadcast %c6_i32 : i32 to vector<1x8xi32>
    %227 = arith.cmpi eq, %14, %226 : vector<1x8xi32>
    %228 = vector.shape_cast %227 : vector<1x8xi1> to vector<1x8xi1>
    %229 = vector.broadcast %228 : vector<1x8xi1> to vector<8x8xi1>
    %230 = vector.shape_cast %225 : vector<8x1xf32> to vector<8x1xf32>
    %231 = vector.broadcast %230 : vector<8x1xf32> to vector<8x8xf32>
    %232 = arith.select %229, %231, %201 : vector<8x8xi1>, vector<8x8xf32>
    %c56 = arith.constant 56 : index
    %c0_60 = arith.constant 0 : index
    %233 = vector.load %arg10[%c56, %c0_60] : memref<64x512xf32, #tpu.memory_space<vmem>>, vector<8x512xf32>
    %c0_61 = arith.constant 0 : index
    %c0_62 = arith.constant 0 : index
    %234 = vector.load %arg3[%c0_61, %c0_62] : memref<128x512xf32, #tpu.memory_space<vmem>>, vector<128x512xf32>
    %cst_63 = arith.constant dense<0.000000e+00> : vector<8x512xf32>
    %235 = tpu.matmul %221, %234, %cst_63 {dimension_numbers = #tpu.dot_dimension_numbers<[1], [0], [0], [1], [0, 0, 1, 1], [], []>} : vector<8x128xf32>, vector<128x512xf32>, vector<8x512xf32> -> vector<8x512xf32>
    %236 = arith.addf %233, %235 : vector<8x512xf32>
    %237 = vector.extract_strided_slice %236 {offsets = [0, 0], sizes = [8, 384], strides = [1, 1]} : vector<8x512xf32> to vector<8x384xf32>
    %238 = arith.negf %237 : vector<8x384xf32>
    %239 = math.exp %238 : vector<8x384xf32>
    %cst_64 = arith.constant 1.000000e+00 : f32
    %240 = vector.broadcast %cst_64 : f32 to vector<8x384xf32>
    %241 = arith.addf %240, %239 : vector<8x384xf32>
    %242 = arith.divf %240, %241 : vector<8x384xf32>
    %243 = vector.extract_strided_slice %242 {offsets = [0, 0], sizes = [8, 128], strides = [1, 1]} : vector<8x384xf32> to vector<8x128xf32>
    %244 = vector.extract_strided_slice %242 {offsets = [0, 128], sizes = [8, 128], strides = [1, 1]} : vector<8x384xf32> to vector<8x128xf32>
    %245 = vector.extract_strided_slice %242 {offsets = [0, 256], sizes = [8, 128], strides = [1, 1]} : vector<8x384xf32> to vector<8x128xf32>
    %246 = vector.extract_strided_slice %236 {offsets = [0, 384], sizes = [8, 128], strides = [1, 1]} : vector<8x512xf32> to vector<8x128xf32>
    %247 = math.tanh %246 : vector<8x128xf32>
    %248 = arith.mulf %244, %219 : vector<8x128xf32>
    %249 = arith.mulf %243, %247 : vector<8x128xf32>
    %250 = arith.addf %248, %249 : vector<8x128xf32>
    %251 = math.tanh %250 : vector<8x128xf32>
    %252 = arith.mulf %245, %251 : vector<8x128xf32>
    %253 = vector.broadcast %13 : vector<1x128xf32> to vector<8x128xf32>
    %254 = arith.mulf %252, %253 : vector<8x128xf32>
    %cst_65 = arith.constant dense<0.000000e+00> : vector<8xf32>
    %255 = vector.multi_reduction <add>, %254, %cst_65 [1] : vector<8x128xf32> to vector<8xf32>
    %256 = vector.shape_cast %255 : vector<8xf32> to vector<8x1xf32>
    %c7_i32 = arith.constant 7 : i32
    %257 = vector.broadcast %c7_i32 : i32 to vector<1x8xi32>
    %258 = arith.cmpi eq, %14, %257 : vector<1x8xi32>
    %259 = vector.shape_cast %258 : vector<1x8xi1> to vector<1x8xi1>
    %260 = vector.broadcast %259 : vector<1x8xi1> to vector<8x8xi1>
    %261 = vector.shape_cast %256 : vector<8x1xf32> to vector<8x1xf32>
    %262 = vector.broadcast %261 : vector<8x1xf32> to vector<8x8xf32>
    %263 = arith.select %260, %262, %232 : vector<8x8xi1>, vector<8x8xf32>
    %c0_66 = arith.constant 0 : index
    %c0_67 = arith.constant 0 : index
    %264 = vector.load %arg8[%c0_66, %c0_67] : memref<8x128xf32, #tpu.memory_space<vmem>>, vector<8x128xf32>
    tpu.vector_store %arg8[%c0_66, %c0_67], %252 {strides = array<i32>} : memref<8x128xf32, #tpu.memory_space<vmem>>, vector<8x128xf32>,
    %c0_68 = arith.constant 0 : index
    %c0_69 = arith.constant 0 : index
    %265 = vector.load %arg9[%c0_68, %c0_69] : memref<8x128xf32, #tpu.memory_space<vmem>>, vector<8x128xf32>
    tpu.vector_store %arg9[%c0_68, %c0_69], %250 {strides = array<i32>} : memref<8x128xf32, #tpu.memory_space<vmem>>, vector<8x128xf32>,
    %c0_70 = arith.constant 0 : index
    %c0_71 = arith.constant 0 : index
    %266 = vector.load %arg6[%c0_70, %c0_71] : memref<1x1xf32, #tpu.memory_space<vmem>>, vector<1x1xf32>
    %267 = vector.broadcast %266 : vector<1x1xf32> to vector<8x8xf32>
    %268 = arith.addf %263, %267 : vector<8x8xf32>
    %c0_72 = arith.constant 0 : index
    %c0_73 = arith.constant 0 : index
    %269 = vector.load %arg7[%c0_72, %c0_73] : memref<8x8xf32, #tpu.memory_space<vmem>>, vector<8x8xf32>
    tpu.vector_store %arg7[%c0_72, %c0_73], %268 {strides = array<i32>} : memref<8x8xf32, #tpu.memory_space<vmem>>, vector<8x8xf32>,
    return
  }
  func.func @transform_0(%arg0: i32) -> (i32, i32, i32) {
    %c0_i32 = arith.constant 0 : i32
    %c0_i32_0 = arith.constant 0 : i32
    %c0_i32_1 = arith.constant 0 : i32
    return %arg0, %c0_i32, %c0_i32_0 : i32, i32, i32
  }
  func.func @transform_1(%arg0: i32) -> (i32, i32) {
    %c0_i32 = arith.constant 0 : i32
    %c0_i32_0 = arith.constant 0 : i32
    %c0_i32_1 = arith.constant 0 : i32
    return %c0_i32, %c0_i32_0 : i32, i32
  }
  func.func @transform_2(%arg0: i32) -> (i32, i32) {
    %c0_i32 = arith.constant 0 : i32
    %c0_i32_0 = arith.constant 0 : i32
    %c0_i32_1 = arith.constant 0 : i32
    return %c0_i32, %c0_i32_0 : i32, i32
  }
  func.func @transform_3(%arg0: i32) -> (i32, i32) {
    %c0_i32 = arith.constant 0 : i32
    %c0_i32_0 = arith.constant 0 : i32
    %c0_i32_1 = arith.constant 0 : i32
    return %c0_i32, %c0_i32_0 : i32, i32
  }
  func.func @transform_4(%arg0: i32) -> (i32, i32) {
    %c0_i32 = arith.constant 0 : i32
    %c0_i32_0 = arith.constant 0 : i32
    %c0_i32_1 = arith.constant 0 : i32
    return %c0_i32, %c0_i32_0 : i32, i32
  }
  func.func @transform_5(%arg0: i32) -> (i32, i32) {
    %c0_i32 = arith.constant 0 : i32
    %c0_i32_0 = arith.constant 0 : i32
    %c0_i32_1 = arith.constant 0 : i32
    return %c0_i32, %c0_i32_0 : i32, i32
  }
  func.func @transform_6(%arg0: i32) -> (i32, i32) {
    %c0_i32 = arith.constant 0 : i32
    %c0_i32_0 = arith.constant 0 : i32
    return %c0_i32, %arg0 : i32, i32
  }
}

</mosaic_0001>

<bundles_post_ra>
// kernel: tpu_custom_call.1
= control target key start
LH: loop header
LB: loop body
LE: loop exit
PB: predicated region body
PF: predicated region fallthrough
CT: control target
= control target key end

     0   :  { %s3348_s0 = inlined_call_operand.hbm [shape: f32[8,8,8], index: 0, kind: input, shape index: {}]   ;;  %s3349_s1 = inlined_call_operand.hbm [shape: f32[8,512], index: 1, kind: input, shape index: {}]   ;;  %s3350_s2 = inlined_call_operand.hbm [shape: f32[128,512], index: 2, kind: input, shape index: {}]   ;;  %s3351_s3 = inlined_call_operand.vmem [shape: f32[1,512], index: 3, kind: input, shape index: {}]   ;;  %s3352_s4 = inlined_call_operand.vmem [shape: f32[1,128], index: 4, kind: input, shape index: {}]   ;;  %s3353_s5 = inlined_call_operand.<no memory space> [shape: f32[1,1], index: 5, kind: input, shape index: {}]   ;;  %s3354_s6 = inlined_call_operand.hbm [shape: f32[8,8], index: 6, kind: output, shape index: {}]  }
   0x1   :  { %v11_v0 = vstv %s3353_s5 }
   0x2   :  { %12 = vst [vmem:[#allocation5] sm:$0x1] %v11_v0 }
   0x3   :  { %13 = vsyncpa [#allocation7], 0 }
   0x4   :  { %14 = vsyncpa [#allocation10], 0 }
   0x5   :  { %15 = vsyncpa [#allocation8], 0  ;;  %s2792_s23 = smov [#allocation9]   ;;  %s2793_s25 = smov [#allocation6]  }
   0x6   :  { %s34_s24 = sshll.u32 %s2792_s23, 4  ;;  %s21_s26 = sshll.u32 %s2793_s25, 4  ;;  %s35_s24 = int_to_ptr.vmem [resolvable:$true] %s34_s24  ;;  %s2840_s26 = int_to_ptr.vmem [resolvable:$true] %s21_s26 }
   0x7   :  { %s2698_s29 = scalar_lea.hbm %s3349_s1, 512 }
   0x8   :  { %p2699_p0 = scmp.ne.s32.totalorder %s3349_s1, %s2698_s29  ;;  %p2702_p1 = scmp.lt.u32.totalorder %s2698_s29, %s3349_s1 }
   0xa   :  { %p2704_p2 = pnand %p2702_p1, %p2699_p0 }
   0xc   :  { %2707 = shalt.err (!%p2704_p2)
}
   0xd   :  { %s2708_s9 = scalar_lea.vmem %s35_s24, 512  ;;  %p2713_p4 = scmp.lt.s32.totalorder %s35_s24, %s35_s24 }
   0xe   :  { %p2709_p3 = scmp.ne.s32.totalorder %s35_s24, %s2708_s9  ;;  %p2714_p5 = scmp.lt.s32.totalorder %s2708_s9, %s2708_s9 }
  0x10   :  { %p2715_p6 = por %p2714_p5, %p2713_p4 }
  0x12   :  { %p2716_p7 = pnand %p2715_p6, %p2709_p3 }
  0x14   :  { %2719 = shalt.err (!%p2716_p7)
}
  0x15   :  { %37 = dma.hbm_to_vmem [thread:$0]  %s3349_s1, 512, %s35_s24, [#allocation10]  }
  0x16   :  { %s2720_s14 = scalar_lea.hbm %s3348_s0, 1024 }
  0x17   :  { %p2721_p8 = scmp.ne.s32.totalorder %s3348_s0, %s2720_s14  ;;  %p2724_p9 = scmp.lt.u32.totalorder %s2720_s14, %s3348_s0 }
  0x19   :  { %p2726_p10 = pnand %p2724_p9, %p2721_p8 }
  0x1b   :  { %2729 = shalt.err (!%p2726_p10)
}
  0x1c   :  { %s2730_s19 = scalar_lea.vmem %s2840_s26, 1024  ;;  %p2735_p12 = scmp.lt.s32.totalorder %s2840_s26, %s2840_s26 }
  0x1d   :  { %p2731_p11 = scmp.ne.s32.totalorder %s2840_s26, %s2730_s19  ;;  %p2736_p13 = scmp.lt.s32.totalorder %s2730_s19, %s2730_s19 }
  0x1f   :  { %p2737_p0 = por %p2736_p13, %p2735_p12 }
  0x21   :  { %p2738_p1 = pnand %p2737_p0, %p2731_p11 }
  0x23   :  { %2741 = shalt.err (!%p2738_p1)
}
  0x24   :  { %s2794_s1 = smov 128   ;;  %s2795_s20 = smov 8  }
  0x25   :  { %27 = dma.hbm_to_vmem [thread:$0]  %s3348_s0, 1024, %s2840_s26, [#allocation7], %s2794_s1, %s2794_s1, %s2795_s20  }
  0x26   :  { %s2796_s23 = smov [#allocation11]   ;;  %s2742_s28 = scalar_lea.hbm %s3350_s2, 8192 }
  0x27   :  { %s43_s24 = sshll.u32 %s2796_s23, 4  ;;  %p2743_p2 = scmp.ne.s32.totalorder %s3350_s2, %s2742_s28  ;;  %s44_s24 = int_to_ptr.vmem [resolvable:$true] %s43_s24 }
  0x28   :  { %p2746_p3 = scmp.lt.u32.totalorder %s2742_s28, %s3350_s2 }
  0x2a   :  { %p2748_p4 = pnand %p2746_p3, %p2743_p2 }
  0x2c   :  { %2751 = shalt.err (!%p2748_p4)
}
  0x2d   :  { %s2752_s8 = scalar_lea.vmem %s44_s24, 8192  ;;  %p2757_p6 = scmp.lt.s32.totalorder %s44_s24, %s44_s24 }
  0x2e   :  { %p2753_p5 = scmp.ne.s32.totalorder %s44_s24, %s2752_s8  ;;  %p2758_p7 = scmp.lt.s32.totalorder %s2752_s8, %s2752_s8 }
  0x30   :  { %p2759_p8 = por %p2758_p7, %p2757_p6 }
  0x32   :  { %p2760_p9 = pnand %p2759_p8, %p2753_p5 }
  0x34   :  { %2763 = shalt.err (!%p2760_p9)
}
  0x35   :  { %s2797_s0 = smov 512   ;;  %s2798_s26 = smov 32  }
  0x36   :  { %49 = dma.hbm_to_vmem [thread:$0]  %s3350_s2, 8192, %s44_s24, [#allocation10], %s2797_s0, %s2797_s0, %s2798_s26  }
  0x37   :  { %2786 = dma.done.wait [#allocation7], 1024  }
  0x38   :  { %2787 = vsyncadd [#allocation7], 4294966272 }
  0x39   :  { %2788 = dma.done.wait [#allocation10], 8704  }
  0x3a   :  { %2789 = vsyncadd [#allocation10], 4294958592  ;;  %v2799_v1 = vmov 0.0   ;;  %v80_v2 = vld [vmem:[#allocation9 + $0x8] sm:$0xff]  ;;  %v82_v3 = vld [vmem:[#allocation9 + $0x18] sm:$0xff]  ;;  %vm105_vm0 = vcmask 64512  }
  0x3b   :  { %194 = vmatprep.mubr.f32.mxu0 %v2799_v1  ;;  %307 = vmatprep.mubr.f32.mxu1 %v2799_v1  ;;  %v79_v4 = vld [vmem:[#allocation9] sm:$0xff]  ;;  %v81_v5 = vld [vmem:[#allocation9 + $0x10] sm:$0xff]  ;;  %v398_v7 = vld [vmem:[#allocation11 + $0x8] sm:$0xff] }
  0x3c   :  { %130 = vmatprep.subr.mxu0 %v80_v2  ;;  %243 = vmatprep.subr.mxu1 %v82_v3  ;;  %v71_v6 = vld [vmem:[#allocation6] sm:$0xff]  ;;  %v402_v8 = vld [vmem:[#allocation11 + $0x28] sm:$0xff]  ;;  %v400_v9 = vld [vmem:[#allocation11 + $0x18] sm:$0xff] }
  0x3d   :  { %131 = vmatpush1.msra.mxu0 %v79_v4  ;;  %244 = vmatpush1.msra.mxu1 %v81_v5  ;;  %v404_v10 = vld [vmem:[#allocation11 + $0x38] sm:$0xff]  ;;  %v2887_v11 = vpack.c.bf16 %v402_v8, %v398_v7  ;;  %v397_v13 = vld [vmem:[#allocation11] sm:$0xff]  ;;  %v399_v15 = vld [vmem:[#allocation11 + $0x10] sm:$0xff] }
  0x3e   :  { %1941 = vmatmul.mubr.msk.f32.vlgmr.msra.gmra.mrb[0].mxu0 %vm105_vm0, %v71_v6  ;;  %1949 = vmatmul.mubr.msk.f32.vlgmr.msra.gmra.mrb[0].mxu1 %vm105_vm0, %v71_v6  ;;  %v2889_v12 = vpack.c.bf16 %v404_v10, %v400_v9  ;;  %v401_v14 = vld [vmem:[#allocation11 + $0x20] sm:$0xff]  ;;  %v403_v17 = vld [vmem:[#allocation11 + $0x30] sm:$0xff]  ;;  %v72_v18 = vld [vmem:[#allocation6 + $0x8] sm:$0xff] }
  0x3f   :  { %v2891_v16 = vpack.c.bf16 %v401_v14, %v397_v13  ;;  %200 = vmatprep.mubr.f32.mxu0 %v2799_v1  ;;  %313 = vmatprep.mubr.f32.mxu1 %v2799_v1  ;;  %v406_v19 = vld [vmem:[#allocation11 + $0x48] sm:$0xff]  ;;  %v2897_v20 = vpack.c.bf16 %v403_v17, %v399_v15  ;;  %v408_v22 = vld [vmem:[#allocation11 + $0x58] sm:$0xff]  ;;  %v405_v26 = vld [vmem:[#allocation11 + $0x40] sm:$0xff] }
  0x40   :  { %1984 = vmatprep.subr.bf16.mxu0 %v2887_v11  ;;  %2016 = vmatprep.subr.bf16.mxu1 %v2889_v12  ;;  %v410_v21 = vld [vmem:[#allocation11 + $0x68] sm:$0xff]  ;;  %v412_v23 = vld [vmem:[#allocation11 + $0x78] sm:$0xff]  ;;  %v409_v27 = vld [vmem:[#allocation11 + $0x60] sm:$0xff] }
  0x41   :  { %1986 = vmatpush1.bf16.msra.mxu0 %v2891_v16  ;;  %v2900_v24 = vpack.c.bf16 %v410_v21, %v406_v19  ;;  %v2902_v25 = vpack.c.bf16 %v412_v23, %v408_v22  ;;  %v407_v28 = vld [vmem:[#allocation11 + $0x50] sm:$0xff]  ;;  %2018 = vmatpush1.bf16.msra.mxu1 %v2897_v20  ;;  %v2906_v29 = vpack.c.bf16 %v409_v27, %v405_v26  ;;  %v414_v32 = vld [vmem:[#allocation11 + $0x88] sm:$0xff]  ;;  %v416_v35 = vld [vmem:[#allocation11 + $0x98] sm:$0xff] }
  0x42   :  { %1942 = vmatmul.mubr.msk.f32.gmra.mrb[2].mxu0 %vm105_vm0, %v72_v18  ;;  %v411_v30 = vld [vmem:[#allocation11 + $0x70] sm:$0xff]  ;;  %1950 = vmatmul.mubr.msk.f32.gmra.mrb[2].mxu1 %vm105_vm0, %v72_v18  ;;  %v418_v34 = vld [vmem:[#allocation11 + $0xa8] sm:$0xff]  ;;  %v420_v36 = vld [vmem:[#allocation11 + $0xb8] sm:$0xff] }
  0x43   :  { %v73_v31 = vld [vmem:[#allocation6 + $0x10] sm:$0xff]  ;;  %1988 = vmatprep.subr.bf16.mxu0 %v2900_v24  ;;  %v2910_v33 = vpack.c.bf16 %v411_v30, %v407_v28  ;;  %2020 = vmatprep.subr.bf16.mxu1 %v2902_v25  ;;  %v2914_v37 = vpack.c.bf16 %v418_v34, %v414_v32  ;;  %v2916_v38 = vpack.c.bf16 %v420_v36, %v416_v35  ;;  %v413_v39 = vld [vmem:[#allocation11 + $0x80] sm:$0xff]  ;;  %v74_v44 = vld [vmem:[#allocation6 + $0x18] sm:$0xff] }
  0x44   :  { %206 = vmatprep.mubr.f32.mxu0 %v2799_v1  ;;  %v417_v40 = vld [vmem:[#allocation11 + $0xa0] sm:$0xff]  ;;  %v415_v41 = vld [vmem:[#allocation11 + $0x90] sm:$0xff]  ;;  %319 = vmatprep.mubr.f32.mxu1 %v2799_v1  ;;  %v422_v45 = vld [vmem:[#allocation11 + $0xc8] sm:$0xff] }
  0x45   :  { %1990 = vmatpush1.bf16.msra.mxu0 %v2906_v29  ;;  %v2920_v42 = vpack.c.bf16 %v417_v40, %v413_v39  ;;  %v419_v43 = vld [vmem:[#allocation11 + $0xb0] sm:$0xff]  ;;  %2022 = vmatpush1.bf16.msra.mxu1 %v2910_v33  ;;  %v426_v47 = vld [vmem:[#allocation11 + $0xe8] sm:$0xff]  ;;  %v424_v48 = vld [vmem:[#allocation11 + $0xd8] sm:$0xff] }
  0x46   :  { %1943 = vmatmul.mubr.msk.f32.gmra.mrb[4].mxu0 %vm105_vm0, %v73_v31  ;;  %v2924_v46 = vpack.c.bf16 %v419_v43, %v415_v41  ;;  %v428_v49 = vld [vmem:[#allocation11 + $0xf8] sm:$0xff]  ;;  %1951 = vmatmul.mubr.msk.f32.gmra.mrb[4].mxu1 %vm105_vm0, %v73_v31  ;;  %v2928_v50 = vpack.c.bf16 %v426_v47, %v422_v45  ;;  %v421_v51 = vld [vmem:[#allocation11 + $0xc0] sm:$0xff]  ;;  %v423_v53 = vld [vmem:[#allocation11 + $0xd0] sm:$0xff] }
  0x47   :  { %1992 = vmatprep.subr.bf16.mxu0 %v2914_v37  ;;  %v425_v52 = vld [vmem:[#allocation11 + $0xe0] sm:$0xff]  ;;  %2024 = vmatprep.subr.bf16.mxu1 %v2916_v38  ;;  %v2932_v54 = vpack.c.bf16 %v428_v49, %v424_v48  ;;  %v427_v55 = vld [vmem:[#allocation11 + $0xf0] sm:$0xff]  ;;  %v430_v56 = vld [vmem:[#allocation11 + $0x108] sm:$0xff] }
  0x48   :  { %212 = vmatprep.mubr.f32.mxu0 %v2799_v1  ;;  %325 = vmatprep.mubr.f32.mxu1 %v2799_v1  ;;  %v2936_v57 = vpack.c.bf16 %v425_v52, %v421_v51  ;;  %v434_v58 = vld [vmem:[#allocation11 + $0x128] sm:$0xff]  ;;  %v432_v59 = vld [vmem:[#allocation11 + $0x118] sm:$0xff]  ;;  %v2940_v61 = vpack.c.bf16 %v427_v55, %v423_v53  ;;  %v429_v62 = vld [vmem:[#allocation11 + $0x100] sm:$0xff] }
  0x49   :  { %1994 = vmatpush1.bf16.msra.mxu0 %v2920_v42  ;;  %v436_v60 = vld [vmem:[#allocation11 + $0x138] sm:$0xff]  ;;  %2026 = vmatpush1.bf16.msra.mxu1 %v2924_v46  ;;  %v433_v63 = vld [vmem:[#allocation11 + $0x120] sm:$0xff]  ;;  %v2944_v2 = vpack.c.bf16 %v434_v58, %v430_v56  ;;  %v431_v3 = vld [vmem:[#allocation11 + $0x110] sm:$0xff] }
  0x4a   :  { %1944 = vmatmul.mubr.msk.f32.gmra.mrb[6].mxu0 %vm105_vm0, %v74_v44  ;;  %1952 = vmatmul.mubr.msk.f32.gmra.mrb[6].mxu1 %vm105_vm0, %v74_v44  ;;  %v75_v0 = vld [vmem:[#allocation6 + $0x20] sm:$0xff]  ;;  %v435_v4 = vld [vmem:[#allocation11 + $0x130] sm:$0xff]  ;;  %v2948_v5 = vpack.c.bf16 %v436_v60, %v432_v59  ;;  %v438_v6 = vld [vmem:[#allocation11 + $0x148] sm:$0xff]  ;;  %v2952_v8 = vpack.c.bf16 %v433_v63, %v429_v62  ;;  %v85_v63 = vlaneseq }
  0x4b   :  { %1996 = vmatprep.subr.bf16.mxu0 %v2928_v50  ;;  %2028 = vmatprep.subr.bf16.mxu1 %v2932_v54  ;;  %v442_v7 = vld [vmem:[#allocation11 + $0x168] sm:$0xff]  ;;  %v440_v9 = vld [vmem:[#allocation11 + $0x158] sm:$0xff]  ;;  %v2956_v13 = vpack.c.bf16 %v435_v4, %v431_v3  ;;  %v437_v14 = vld [vmem:[#allocation11 + $0x140] sm:$0xff] }
  0x4c   :  { %218 = vmatprep.mubr.f32.mxu0 %v2799_v1  ;;  %331 = vmatprep.mubr.f32.mxu1 %v2799_v1  ;;  %v444_v10 = vld [vmem:[#allocation11 + $0x178] sm:$0xff]  ;;  %v441_v15 = vld [vmem:[#allocation11 + $0x160] sm:$0xff]  ;;  %v76_v17 = vld [vmem:[#allocation6 + $0x28] sm:$0xff]  ;;  %v2960_v18 = vpack.c.bf16 %v442_v7, %v438_v6 }
  0x4d   :  { %1998 = vmatpush1.bf16.msra.mxu0 %v2936_v57  ;;  %2030 = vmatpush1.bf16.msra.mxu1 %v2940_v61  ;;  %v439_v19 = vld [vmem:[#allocation11 + $0x150] sm:$0xff]  ;;  %v2964_v22 = vpack.c.bf16 %v444_v10, %v440_v9  ;;  %v446_v23 = vld [vmem:[#allocation11 + $0x188] sm:$0xff]  ;;  %v2968_v27 = vpack.c.bf16 %v441_v15, %v437_v14  ;;  %v448_v28 = vld [vmem:[#allocation11 + $0x198] sm:$0xff] }
  0x4e   :  { %1945 = vmatmul.mubr.msk.f32.gmra.mrb[8].mxu0 %vm105_vm0, %v75_v0  ;;  %1953 = vmatmul.mubr.msk.f32.gmra.mrb[8].mxu1 %vm105_vm0, %v75_v0  ;;  %v443_v21 = vld [vmem:[#allocation11 + $0x170] sm:$0xff]  ;;  %v450_v26 = vld [vmem:[#allocation11 + $0x1a8] sm:$0xff]  ;;  %v452_v30 = vld [vmem:[#allocation11 + $0x1b8] sm:$0xff]  ;;  %v86_v0 = vshrl.u32 %v85_v63, 7 }
  0x4f   :  { %2000 = vmatprep.subr.bf16.mxu0 %v2944_v2  ;;  %2032 = vmatprep.subr.bf16.mxu1 %v2948_v5  ;;  %v2972_v31 = vpack.c.bf16 %v443_v21, %v439_v19  ;;  %v445_v32 = vld [vmem:[#allocation11 + $0x180] sm:$0xff]  ;;  %v77_v35 = vld [vmem:[#allocation6 + $0x30] sm:$0xff]  ;;  %v2976_v36 = vpack.c.bf16 %v450_v26, %v446_v23  ;;  %v2980_v41 = vpack.c.bf16 %v452_v30, %v448_v28  ;;  %v454_v43 = vld [vmem:[#allocation11 + $0x1c8] sm:$0xff] }
  0x50   :  { %224 = vmatprep.mubr.f32.mxu0 %v2799_v1  ;;  %337 = vmatprep.mubr.f32.mxu1 %v2799_v1  ;;  %v449_v34 = vld [vmem:[#allocation11 + $0x1a0] sm:$0xff]  ;;  %v447_v39 = vld [vmem:[#allocation11 + $0x190] sm:$0xff]  ;;  %v458_v44 = vld [vmem:[#allocation11 + $0x1e8] sm:$0xff]  ;;  %v87_v3 = vsub.s32 0, %v86_v0  ;;  %v91_v6 = vsub.s32 1, %v86_v0  ;;  %v95_v14 = vsub.s32 2, %v86_v0 }
  0x51   :  { %2002 = vmatpush1.bf16.msra.mxu0 %v2952_v8  ;;  %2034 = vmatpush1.bf16.msra.mxu1 %v2956_v13  ;;  %v451_v40 = vld [vmem:[#allocation11 + $0x1b0] sm:$0xff]  ;;  %v2984_v45 = vpack.c.bf16 %v449_v34, %v445_v32  ;;  %v456_v47 = vld [vmem:[#allocation11 + $0x1d8] sm:$0xff]  ;;  %v453_v51 = vld [vmem:[#allocation11 + $0x1c0] sm:$0xff]  ;;  %v2992_v55 = vpack.c.bf16 %v458_v44, %v454_v43  ;;  %v99_v32 = vsub.s32 3, %v86_v0 }
  0x52   :  { %1946 = vmatmul.mubr.msk.f32.gmra.mrb[10].mxu0 %vm105_vm0, %v76_v17  ;;  %1954 = vmatmul.mubr.msk.f32.gmra.mrb[10].mxu1 %vm105_vm0, %v76_v17  ;;  %v460_v48 = vld [vmem:[#allocation11 + $0x1f8] sm:$0xff]  ;;  %v2988_v49 = vpack.c.bf16 %v451_v40, %v447_v39  ;;  %v457_v52 = vld [vmem:[#allocation11 + $0x1e0] sm:$0xff]  ;;  %v455_v56 = vld [vmem:[#allocation11 + $0x1d0] sm:$0xff] }
  0x53   :  { %2004 = vmatprep.subr.bf16.mxu0 %v2960_v18  ;;  %2036 = vmatprep.subr.bf16.mxu1 %v2964_v22  ;;  %v78_v53 = vld [vmem:[#allocation6 + $0x38] sm:$0xff]  ;;  %v459_v58 = vld [vmem:[#allocation11 + $0x1f0] sm:$0xff]  ;;  %v2996_v59 = vpack.c.bf16 %v460_v48, %v456_v47  ;;  %v3000_v60 = vpack.c.bf16 %v457_v52, %v453_v51 }
  0x54   :  { %230 = vmatprep.mubr.f32.mxu0 %v2799_v1  ;;  %343 = vmatprep.mubr.f32.mxu1 %v2799_v1  ;;  %v3004_v62 = vpack.c.bf16 %v459_v58, %v455_v56  ;;  %v83_v4 = vld [vmem:[%s3351_s3] sm:$0xf] }
  0x55   :  { %2006 = vmatpush1.bf16.msra.mxu0 %v2968_v27  ;;  %2038 = vmatpush1.bf16.msra.mxu1 %v2972_v31  ;;  %v3055_v7 = vrot.slane %v83_v4, %v87_v3  ;;  %v3057_v9 = vrot.slane %v83_v4, %v91_v6  ;;  %v3061_v28 = vrot.slane %v83_v4, %v95_v14  ;;  %v3073_v14 = vld [vmem:[%s3352_s4] ss:$0 sm:$0xff]  ;;  %s2801_s4 = smov [#allocation12]  }
  0x56   :  { %1947 = vmatmul.mubr.msk.f32.gmra.mrb[12].mxu0 %vm105_vm0, %v77_v35  ;;  %1955 = vmatmul.mubr.msk.f32.gmra.mrb[12].mxu1 %vm105_vm0, %v77_v35  ;;  %v3064_v35 = vrot.slane %v83_v4, %v99_v32  ;;  %s1931_s13 = sshll.u32 %s2801_s4, 4  ;;  %s1932_s13 = int_to_ptr.vmem [resolvable:$true] %s1931_s13 }
  0x57   :  { %2008 = vmatprep.subr.bf16.mxu0 %v2976_v36  ;;  %2040 = vmatprep.subr.bf16.mxu1 %v2980_v41  ;;  %s2764_s14 = scalar_lea.vmem %s1932_s13, 128  ;;  %p2769_p11 = scmp.lt.s32.totalorder %s1932_s13, %s1932_s13 }
  0x58   :  { %236 = vmatprep.mubr.f32.mxu0 %v2799_v1  ;;  %349 = vmatprep.mubr.f32.mxu1 %v2799_v1  ;;  %p2765_p10 = scmp.ne.s32.totalorder %s1932_s13, %s2764_s14  ;;  %p2770_p12 = scmp.lt.s32.totalorder %s2764_s14, %s2764_s14 }
  0x59   :  { %2010 = vmatpush1.bf16.msra.mxu0 %v2984_v45  ;;  %2042 = vmatpush1.bf16.msra.mxu1 %v2988_v49 }
  0x5a   :  { %1948 = vmatmul.mubr.msk.f32.gmra.mrb[14].mxu0 %vm105_vm0, %v78_v53  ;;  %1956 = vmatmul.mubr.msk.f32.gmra.mrb[14].mxu1 %vm105_vm0, %v78_v53  ;;  %p2771_p13 = por %p2770_p12, %p2769_p11 }
  0x5b   :  { %2012 = vmatprep.subr.bf16.mxu0 %v2992_v55  ;;  %2044 = vmatprep.subr.bf16.mxu1 %v2996_v59 }
  0x5c   :  { %525 = vmatprep.mubr.f32.mxu0 %v2799_v1  ;;  %596 = vmatprep.mubr.f32.mxu1 %v2799_v1  ;;  %p2772_p0 = pnand %p2771_p13, %p2765_p10 }
  0x5d   :  { %2014 = vmatpush1.bf16.msra.mxu0 %v3000_v60  ;;  %2046 = vmatpush1.bf16.msra.mxu1 %v3004_v62 }
  0x5e   :  { %2048 = vmatprep.subr.bf16.mxu0 %v2887_v11  ;;  %2080 = vmatprep.subr.bf16.mxu1 %v2889_v12 }
  0x60   :  { %526 = vmatmul.mubr.f32.vlgmr.msra.gmra.mrb[0].mxu0 %v2799_v1  ;;  %597 = vmatmul.mubr.f32.vlgmr.msra.gmra.mrb[0].mxu1 %v2799_v1 }
  0x61   :  { %2050 = vmatpush1.bf16.msra.mxu0 %v2891_v16  ;;  %2082 = vmatpush1.bf16.msra.mxu1 %v2897_v20 }
  0x62   :  { %2052 = vmatprep.subr.bf16.mxu0 %v2900_v24  ;;  %2084 = vmatprep.subr.bf16.mxu1 %v2902_v25 }
  0x63   :  { %712 = vmatprep.mubr.f32.mxu0 %v2799_v1  ;;  %783 = vmatprep.mubr.f32.mxu1 %v2799_v1 }
  0x65   :  { %2054 = vmatpush1.bf16.msra.mxu0 %v2906_v29  ;;  %2086 = vmatpush1.bf16.msra.mxu1 %v2910_v33 }
  0x66   :  { %2056 = vmatprep.subr.bf16.mxu0 %v2914_v37  ;;  %2088 = vmatprep.subr.bf16.mxu1 %v2916_v38 }
  0x69   :  { %2058 = vmatpush1.bf16.msra.mxu0 %v2920_v42  ;;  %2090 = vmatpush1.bf16.msra.mxu1 %v2924_v46 }
  0x6a   :  { %2060 = vmatprep.subr.bf16.mxu0 %v2928_v50  ;;  %2092 = vmatprep.subr.bf16.mxu1 %v2932_v54 }
  0x6d   :  { %2062 = vmatpush1.bf16.msra.mxu0 %v2936_v57  ;;  %2094 = vmatpush1.bf16.msra.mxu1 %v2940_v61 }
  0x6e   :  { %2064 = vmatprep.subr.bf16.mxu0 %v2944_v2  ;;  %2096 = vmatprep.subr.bf16.mxu1 %v2948_v5 }
  0x71   :  { %2066 = vmatpush1.bf16.msra.mxu0 %v2952_v8  ;;  %2098 = vmatpush1.bf16.msra.mxu1 %v2956_v13 }
  0x72   :  { %2068 = vmatprep.subr.bf16.mxu0 %v2960_v18  ;;  %2100 = vmatprep.subr.bf16.mxu1 %v2964_v22 }
  0x75   :  { %2070 = vmatpush1.bf16.msra.mxu0 %v2968_v27  ;;  %2102 = vmatpush1.bf16.msra.mxu1 %v2972_v31 }
  0x76   :  { %2072 = vmatprep.subr.bf16.mxu0 %v2976_v36  ;;  %2104 = vmatprep.subr.bf16.mxu1 %v2980_v41 }
  0x79   :  { %2074 = vmatpush1.bf16.msra.mxu0 %v2984_v45  ;;  %2106 = vmatpush1.bf16.msra.mxu1 %v2988_v49 }
  0x7a   :  { %2076 = vmatprep.subr.bf16.mxu0 %v2992_v55  ;;  %2108 = vmatprep.subr.bf16.mxu1 %v2996_v59 }
  0x7d   :  { %2078 = vmatpush1.bf16.msra.mxu0 %v3000_v60  ;;  %2110 = vmatpush1.bf16.msra.mxu1 %v3004_v62 }
  0x7e   :  { %2112 = vmatprep.subr.bf16.mxu0 %v2887_v11  ;;  %2144 = vmatprep.subr.bf16.mxu1 %v2889_v12 }
 0x133   :  { %v527_v10 = vpop.f32.mrb[0].mxu0  ;;  %v598_v17 = vpop.f32.mrb[0].mxu1 }
 0x134   :  { %v2495_v15 = vadd.f32 %v527_v10, %v3055_v7  ;;  %v529_v19 = vpop.f32.mrb[1].mxu0  ;;  %v600_v23 = vpop.f32.mrb[1].mxu1  ;;  %v2511_v34 = vadd.f32 %v598_v17, %v3061_v28 }
 0x135   :  { %v2496_v21 = vadd.f32 %v529_v19, %v3057_v9  ;;  %v2512_v40 = vadd.f32 %v600_v23, %v3064_v35 }
 0x136   :  { %v1957_v26 = vmul.f32 -1.442695, %v2495_v15  ;;  %v1959_v39 = vmul.f32 -1.442695, %v2511_v34 }
 0x137   :  { %v1958_v30 = vmul.f32 -1.442695, %v2496_v21 }
 0x138   :  { %2570 = vpow2.f32 %v1957_v26 }
 0x139   :  { %2572 = vpow2.f32 %v1958_v30 }
 0x13a   :  { %2574 = vpow2.f32 %v1959_v39 }
 0x13b   :  { %2576 = vtanh.f32 %v2512_v40 }
 0x142   :  { %v2571_v43 = vpop.eup %2570 }
 0x143   :  { %v616_v44 = vadd.f32 1.0, %v2571_v43  ;;  %v2573_v47 = vpop.eup %2572 }
 0x144   :  { %v617_v48 = vadd.f32 1.0, %v2573_v47  ;;  %v2575_v51 = vpop.eup %2574 }
 0x145   :  { %2578 = vrcp.f32 %v616_v44  ;;  %v2577_v52 = vpop.eup %2576  ;;  %v618_v0 = vadd.f32 1.0, %v2575_v51 }
 0x146   :  { %2580 = vrcp.f32 %v617_v48 }
 0x147   :  { %2582 = vrcp.f32 %v618_v0 }
 0x14f   :  { %v2579_v53 = vpop.eup %2578 }
 0x150   :  { %v627_v56 = vmul.f32 %v2579_v53, %v2577_v52  ;;  %v2581_v58 = vpop.eup %2580 }
 0x151   :  { %v626_v3 = vmul.f32 0.0, %v2581_v58  ;;  %v2583_v6 = vpop.eup %2582 }
 0x153   :  { %v3067_v4 = vadd.f32 %v627_v56, %v626_v3 }
 0x155   :  { %2584 = vtanh.f32 %v3067_v4 }
 0x15f   :  { %v2585_v10 = vpop.eup %2584 }
 0x160   :  { %v630_v15 = vmul.f32 %v2585_v10, %v2583_v6 }
 0x162   :  { %713 = vmatmul.mubr.f32.vlgmr.msra.gmra.mrb[2].mxu0 %v630_v15  ;;  %784 = vmatmul.mubr.f32.vlgmr.msra.gmra.mrb[2].mxu1 %v630_v15  ;;  %v637_v17 = vmul.f32 %v3073_v14, %v630_v15 }
 0x163   :  { %2114 = vmatpush1.bf16.msra.mxu0 %v2891_v16  ;;  %2146 = vmatpush1.bf16.msra.mxu1 %v2897_v20 }
 0x164   :  { %638 = vadd.xlane.f32.xlu0 %v637_v17  ;;  %2116 = vmatprep.subr.bf16.mxu0 %v2900_v24 }
 0x165   :  { %2148 = vmatprep.subr.bf16.mxu1 %v2902_v25  ;;  %893 = vmatprep.mubr.f32.mxu0 %v2799_v1 }
 0x166   :  { %964 = vmatprep.mubr.f32.mxu1 %v2799_v1 }
 0x167   :  { %2118 = vmatpush1.bf16.msra.mxu0 %v2906_v29  ;;  %2150 = vmatpush1.bf16.msra.mxu1 %v2910_v33 }
 0x168   :  { %2120 = vmatprep.subr.bf16.mxu0 %v2914_v37  ;;  %2152 = vmatprep.subr.bf16.mxu1 %v2916_v38 }
 0x16b   :  { %2122 = vmatpush1.bf16.msra.mxu0 %v2920_v42  ;;  %2154 = vmatpush1.bf16.msra.mxu1 %v2924_v46 }
 0x16c   :  { %2124 = vmatprep.subr.bf16.mxu0 %v2928_v50  ;;  %2156 = vmatprep.subr.bf16.mxu1 %v2932_v54 }
 0x16f   :  { %2126 = vmatpush1.bf16.msra.mxu0 %v2936_v57  ;;  %2158 = vmatpush1.bf16.msra.mxu1 %v2940_v61 }
 0x170   :  { %2128 = vmatprep.subr.bf16.mxu0 %v2944_v2  ;;  %2160 = vmatprep.subr.bf16.mxu1 %v2948_v5 }
 0x173   :  { %2130 = vmatpush1.bf16.msra.mxu0 %v2952_v8  ;;  %2162 = vmatpush1.bf16.msra.mxu1 %v2956_v13 }
 0x174   :  { %2132 = vmatprep.subr.bf16.mxu0 %v2960_v18  ;;  %2164 = vmatprep.subr.bf16.mxu1 %v2964_v22 }
 0x177   :  { %2134 = vmatpush1.bf16.msra.mxu0 %v2968_v27  ;;  %2166 = vmatpush1.bf16.msra.mxu1 %v2972_v31 }
 0x178   :  { %2136 = vmatprep.subr.bf16.mxu0 %v2976_v36  ;;  %2168 = vmatprep.subr.bf16.mxu1 %v2980_v41 }
 0x17b   :  { %2138 = vmatpush1.bf16.msra.mxu0 %v2984_v45  ;;  %2170 = vmatpush1.bf16.msra.mxu1 %v2988_v49 }
 0x17c   :  { %2140 = vmatprep.subr.bf16.mxu0 %v2992_v55  ;;  %2172 = vmatprep.subr.bf16.mxu1 %v2996_v59 }
 0x17f   :  { %2142 = vmatpush1.bf16.msra.mxu0 %v3000_v60  ;;  %2174 = vmatpush1.bf16.msra.mxu1 %v3004_v62 }
 0x180   :  { %2176 = vmatprep.subr.bf16.mxu0 %v2887_v11  ;;  %2208 = vmatprep.subr.bf16.mxu1 %v2889_v12 }
 0x235   :  { %v714_v19 = vpop.f32.mrb[2].mxu0  ;;  %v785_v21 = vpop.f32.mrb[2].mxu1 }
 0x236   :  { %v2497_v23 = vadd.f32 %v714_v19, %v3055_v7  ;;  %v716_v26 = vpop.f32.mrb[3].mxu0  ;;  %v787_v30 = vpop.f32.mrb[3].mxu1  ;;  %v2513_v40 = vadd.f32 %v785_v21, %v3061_v28 }
 0x237   :  { %v2498_v32 = vadd.f32 %v716_v26, %v3057_v9  ;;  %v2514_v43 = vadd.f32 %v787_v30, %v3064_v35 }
 0x238   :  { %v1961_v34 = vmul.f32 -1.442695, %v2497_v23  ;;  %v1963_v44 = vmul.f32 -1.442695, %v2513_v40 }
 0x239   :  { %v1962_v39 = vmul.f32 -1.442695, %v2498_v32 }
 0x23a   :  { %2586 = vpow2.f32 %v1961_v34 }
 0x23b   :  { %2588 = vpow2.f32 %v1962_v39 }
 0x23c   :  { %2590 = vtanh.f32 %v2514_v43 }
 0x23d   :  { %2592 = vpow2.f32 %v1963_v44 }
 0x244   :  { %v2587_v47 = vpop.eup %2586 }
 0x245   :  { %v803_v48 = vadd.f32 1.0, %v2587_v47  ;;  %v2589_v51 = vpop.eup %2588 }
 0x246   :  { %v804_v52 = vadd.f32 1.0, %v2589_v51  ;;  %v2591_v53 = vpop.eup %2590 }
 0x247   :  { %2594 = vrcp.f32 %v803_v48  ;;  %v2593_v56 = vpop.eup %2592 }
 0x248   :  { %2596 = vrcp.f32 %v804_v52  ;;  %v805_v6 = vadd.f32 1.0, %v2593_v56 }
 0x24a   :  { %2598 = vrcp.f32 %v805_v6 }
 0x251   :  { %v2595_v58 = vpop.eup %2594 }
 0x252   :  { %v814_v0 = vmul.f32 %v2595_v58, %v2591_v53  ;;  %v2597_v3 = vpop.eup %2596 }
 0x253   :  { %v813_v10 = vmul.f32 %v2597_v3, %v3067_v4 }
 0x254   :  { %v2599_v17 = vpop.eup %2598 }
 0x255   :  { %v3115_v15 = vadd.f32 %v814_v0, %v813_v10 }
 0x257   :  { %2600 = vtanh.f32 %v3115_v15 }
 0x261   :  { %v2601_v19 = vpop.eup %2600 }
 0x262   :  { %v817_v21 = vmul.f32 %v2601_v19, %v2599_v17 }
 0x264   :  { %894 = vmatmul.mubr.f32.vlgmr.msra.gmra.mrb[4].mxu0 %v817_v21  ;;  %965 = vmatmul.mubr.f32.vlgmr.msra.gmra.mrb[4].mxu1 %v817_v21  ;;  %v818_v23 = vmul.f32 %v3073_v14, %v817_v21 }
 0x265   :  { %2178 = vmatpush1.bf16.msra.mxu0 %v2891_v16  ;;  %2210 = vmatpush1.bf16.msra.mxu1 %v2897_v20 }
 0x266   :  { %819 = vadd.xlane.f32.xlu0 %v818_v23  ;;  %2180 = vmatprep.subr.bf16.mxu0 %v2900_v24 }
 0x267   :  { %2212 = vmatprep.subr.bf16.mxu1 %v2902_v25  ;;  %1074 = vmatprep.mubr.f32.mxu0 %v2799_v1 }
 0x268   :  { %1145 = vmatprep.mubr.f32.mxu1 %v2799_v1 }
 0x269   :  { %2182 = vmatpush1.bf16.msra.mxu0 %v2906_v29  ;;  %2214 = vmatpush1.bf16.msra.mxu1 %v2910_v33 }
 0x26a   :  { %2184 = vmatprep.subr.bf16.mxu0 %v2914_v37  ;;  %2216 = vmatprep.subr.bf16.mxu1 %v2916_v38 }
 0x26d   :  { %2186 = vmatpush1.bf16.msra.mxu0 %v2920_v42  ;;  %2218 = vmatpush1.bf16.msra.mxu1 %v2924_v46 }
 0x26e   :  { %2188 = vmatprep.subr.bf16.mxu0 %v2928_v50  ;;  %2220 = vmatprep.subr.bf16.mxu1 %v2932_v54 }
 0x271   :  { %2190 = vmatpush1.bf16.msra.mxu0 %v2936_v57  ;;  %2222 = vmatpush1.bf16.msra.mxu1 %v2940_v61 }
 0x272   :  { %2192 = vmatprep.subr.bf16.mxu0 %v2944_v2  ;;  %2224 = vmatprep.subr.bf16.mxu1 %v2948_v5 }
 0x275   :  { %2194 = vmatpush1.bf16.msra.mxu0 %v2952_v8  ;;  %2226 = vmatpush1.bf16.msra.mxu1 %v2956_v13 }
 0x276   :  { %2196 = vmatprep.subr.bf16.mxu0 %v2960_v18  ;;  %2228 = vmatprep.subr.bf16.mxu1 %v2964_v22 }
 0x279   :  { %2198 = vmatpush1.bf16.msra.mxu0 %v2968_v27  ;;  %2230 = vmatpush1.bf16.msra.mxu1 %v2972_v31 }
 0x27a   :  { %2200 = vmatprep.subr.bf16.mxu0 %v2976_v36  ;;  %2232 = vmatprep.subr.bf16.mxu1 %v2980_v41 }
 0x27d   :  { %2202 = vmatpush1.bf16.msra.mxu0 %v2984_v45  ;;  %2234 = vmatpush1.bf16.msra.mxu1 %v2988_v49 }
 0x27e   :  { %2204 = vmatprep.subr.bf16.mxu0 %v2992_v55  ;;  %2236 = vmatprep.subr.bf16.mxu1 %v2996_v59 }
 0x281   :  { %2206 = vmatpush1.bf16.msra.mxu0 %v3000_v60  ;;  %2238 = vmatpush1.bf16.msra.mxu1 %v3004_v62 }
 0x282   :  { %2240 = vmatprep.subr.bf16.mxu0 %v2887_v11  ;;  %2272 = vmatprep.subr.bf16.mxu1 %v2889_v12 }
 0x337   :  { %v895_v4 = vpop.f32.mrb[4].mxu0  ;;  %v966_v26 = vpop.f32.mrb[4].mxu1 }
 0x338   :  { %v2499_v30 = vadd.f32 %v895_v4, %v3055_v7  ;;  %v897_v32 = vpop.f32.mrb[5].mxu0  ;;  %v968_v34 = vpop.f32.mrb[5].mxu1  ;;  %v2515_v44 = vadd.f32 %v966_v26, %v3061_v28 }
 0x339   :  { %v2500_v39 = vadd.f32 %v897_v32, %v3057_v9  ;;  %v2516_v47 = vadd.f32 %v968_v34, %v3064_v35 }
 0x33a   :  { %v1964_v40 = vmul.f32 -1.442695, %v2499_v30  ;;  %v1966_v48 = vmul.f32 -1.442695, %v2515_v44 }
 0x33b   :  { %v1965_v43 = vmul.f32 -1.442695, %v2500_v39 }
 0x33c   :  { %2602 = vpow2.f32 %v1964_v40 }
 0x33d   :  { %2604 = vpow2.f32 %v1965_v43 }
 0x33e   :  { %2606 = vtanh.f32 %v2516_v47 }
 0x33f   :  { %2608 = vpow2.f32 %v1966_v48 }
 0x346   :  { %v2603_v51 = vpop.eup %2602 }
 0x347   :  { %v984_v52 = vadd.f32 1.0, %v2603_v51  ;;  %v2605_v53 = vpop.eup %2604 }
 0x348   :  { %v985_v56 = vadd.f32 1.0, %v2605_v53  ;;  %v2607_v58 = vpop.eup %2606 }
 0x349   :  { %2610 = vrcp.f32 %v984_v52  ;;  %v2609_v0 = vpop.eup %2608 }
 0x34a   :  { %2612 = vrcp.f32 %v985_v56  ;;  %v986_v17 = vadd.f32 1.0, %v2609_v0 }
 0x34c   :  { %2614 = vrcp.f32 %v986_v17 }
 0x353   :  { %v2611_v3 = vpop.eup %2610 }
 0x354   :  { %v995_v6 = vmul.f32 %v2611_v3, %v2607_v58  ;;  %v2613_v10 = vpop.eup %2612 }
 0x355   :  { %v994_v19 = vmul.f32 %v2613_v10, %v3115_v15 }
 0x356   :  { %v2615_v23 = vpop.eup %2614 }
 0x357   :  { %v3158_v21 = vadd.f32 %v995_v6, %v994_v19 }
 0x359   :  { %2616 = vtanh.f32 %v3158_v21 }
 0x363   :  { %v2617_v4 = vpop.eup %2616 }
 0x364   :  { %v998_v26 = vmul.f32 %v2617_v4, %v2615_v23 }
 0x366   :  { %1075 = vmatmul.mubr.f32.vlgmr.msra.gmra.mrb[6].mxu0 %v998_v26  ;;  %1146 = vmatmul.mubr.f32.vlgmr.msra.gmra.mrb[6].mxu1 %v998_v26  ;;  %v999_v30 = vmul.f32 %v3073_v14, %v998_v26 }
 0x367   :  { %2242 = vmatpush1.bf16.msra.mxu0 %v2891_v16  ;;  %2274 = vmatpush1.bf16.msra.mxu1 %v2897_v20 }
 0x368   :  { %1000 = vadd.xlane.f32.xlu1 %v999_v30  ;;  %2244 = vmatprep.subr.bf16.mxu0 %v2900_v24 }
 0x369   :  { %2276 = vmatprep.subr.bf16.mxu1 %v2902_v25  ;;  %1255 = vmatprep.mubr.f32.mxu0 %v2799_v1 }
 0x36a   :  { %1326 = vmatprep.mubr.f32.mxu1 %v2799_v1 }
 0x36b   :  { %2246 = vmatpush1.bf16.msra.mxu0 %v2906_v29  ;;  %2278 = vmatpush1.bf16.msra.mxu1 %v2910_v33 }
 0x36c   :  { %2248 = vmatprep.subr.bf16.mxu0 %v2914_v37  ;;  %2280 = vmatprep.subr.bf16.mxu1 %v2916_v38 }
 0x36f   :  { %2250 = vmatpush1.bf16.msra.mxu0 %v2920_v42  ;;  %2282 = vmatpush1.bf16.msra.mxu1 %v2924_v46 }
 0x370   :  { %2252 = vmatprep.subr.bf16.mxu0 %v2928_v50  ;;  %2284 = vmatprep.subr.bf16.mxu1 %v2932_v54 }
 0x373   :  { %2254 = vmatpush1.bf16.msra.mxu0 %v2936_v57  ;;  %2286 = vmatpush1.bf16.msra.mxu1 %v2940_v61 }
 0x374   :  { %2256 = vmatprep.subr.bf16.mxu0 %v2944_v2  ;;  %2288 = vmatprep.subr.bf16.mxu1 %v2948_v5 }
 0x377   :  { %2258 = vmatpush1.bf16.msra.mxu0 %v2952_v8  ;;  %2290 = vmatpush1.bf16.msra.mxu1 %v2956_v13 }
 0x378   :  { %2260 = vmatprep.subr.bf16.mxu0 %v2960_v18  ;;  %2292 = vmatprep.subr.bf16.mxu1 %v2964_v22 }
 0x37b   :  { %2262 = vmatpush1.bf16.msra.mxu0 %v2968_v27  ;;  %2294 = vmatpush1.bf16.msra.mxu1 %v2972_v31 }
 0x37c   :  { %2264 = vmatprep.subr.bf16.mxu0 %v2976_v36  ;;  %2296 = vmatprep.subr.bf16.mxu1 %v2980_v41 }
 0x37f   :  { %2266 = vmatpush1.bf16.msra.mxu0 %v2984_v45  ;;  %2298 = vmatpush1.bf16.msra.mxu1 %v2988_v49 }
 0x380   :  { %2268 = vmatprep.subr.bf16.mxu0 %v2992_v55  ;;  %2300 = vmatprep.subr.bf16.mxu1 %v2996_v59 }
 0x383   :  { %2270 = vmatpush1.bf16.msra.mxu0 %v3000_v60  ;;  %2302 = vmatpush1.bf16.msra.mxu1 %v3004_v62 }
 0x384   :  { %2304 = vmatprep.subr.bf16.mxu0 %v2887_v11  ;;  %2336 = vmatprep.subr.bf16.mxu1 %v2889_v12 }
 0x439   :  { %v1076_v15 = vpop.f32.mrb[6].mxu0  ;;  %v1147_v32 = vpop.f32.mrb[6].mxu1 }
 0x43a   :  { %v2501_v34 = vadd.f32 %v1076_v15, %v3055_v7  ;;  %v1078_v39 = vpop.f32.mrb[7].mxu0  ;;  %v1149_v40 = vpop.f32.mrb[7].mxu1  ;;  %v2517_v48 = vadd.f32 %v1147_v32, %v3061_v28 }
 0x43b   :  { %v2502_v43 = vadd.f32 %v1078_v39, %v3057_v9  ;;  %v2518_v51 = vadd.f32 %v1149_v40, %v3064_v35 }
 0x43c   :  { %v1967_v44 = vmul.f32 -1.442695, %v2501_v34  ;;  %v1969_v52 = vmul.f32 -1.442695, %v2517_v48 }
 0x43d   :  { %v1968_v47 = vmul.f32 -1.442695, %v2502_v43 }
 0x43e   :  { %2618 = vpow2.f32 %v1967_v44 }
 0x43f   :  { %2620 = vpow2.f32 %v1968_v47 }
 0x440   :  { %2622 = vtanh.f32 %v2518_v51 }
 0x441   :  { %2624 = vpow2.f32 %v1969_v52 }
 0x448   :  { %v2619_v53 = vpop.eup %2618 }
 0x449   :  { %v1165_v56 = vadd.f32 1.0, %v2619_v53  ;;  %v2621_v58 = vpop.eup %2620 }
 0x44a   :  { %v1166_v0 = vadd.f32 1.0, %v2621_v58  ;;  %v2623_v3 = vpop.eup %2622 }
 0x44b   :  { %2626 = vrcp.f32 %v1165_v56  ;;  %v2625_v6 = vpop.eup %2624 }
 0x44c   :  { %2628 = vrcp.f32 %v1166_v0  ;;  %v1167_v23 = vadd.f32 1.0, %v2625_v6 }
 0x44e   :  { %2630 = vrcp.f32 %v1167_v23 }
 0x455   :  { %v2627_v10 = vpop.eup %2626 }
 0x456   :  { %v1176_v17 = vmul.f32 %v2627_v10, %v2623_v3  ;;  %v2629_v19 = vpop.eup %2628 }
 0x457   :  { %v1175_v4 = vmul.f32 %v2629_v19, %v3158_v21 }
 0x458   :  { %v2631_v30 = vpop.eup %2630 }
 0x459   :  { %v3201_v26 = vadd.f32 %v1176_v17, %v1175_v4 }
 0x45b   :  { %2632 = vtanh.f32 %v3201_v26 }
 0x465   :  { %v2633_v15 = vpop.eup %2632 }
 0x466   :  { %v1179_v32 = vmul.f32 %v2633_v15, %v2631_v30 }
 0x468   :  { %1256 = vmatmul.mubr.f32.vlgmr.msra.gmra.mrb[8].mxu0 %v1179_v32  ;;  %1327 = vmatmul.mubr.f32.vlgmr.msra.gmra.mrb[8].mxu1 %v1179_v32  ;;  %v1180_v34 = vmul.f32 %v3073_v14, %v1179_v32 }
 0x469   :  { %2306 = vmatpush1.bf16.msra.mxu0 %v2891_v16  ;;  %2338 = vmatpush1.bf16.msra.mxu1 %v2897_v20 }
 0x46a   :  { %1181 = vadd.xlane.f32.xlu1 %v1180_v34  ;;  %2308 = vmatprep.subr.bf16.mxu0 %v2900_v24 }
 0x46b   :  { %2340 = vmatprep.subr.bf16.mxu1 %v2902_v25  ;;  %1436 = vmatprep.mubr.f32.mxu0 %v2799_v1 }
 0x46c   :  { %1507 = vmatprep.mubr.f32.mxu1 %v2799_v1 }
 0x46d   :  { %2310 = vmatpush1.bf16.msra.mxu0 %v2906_v29  ;;  %2342 = vmatpush1.bf16.msra.mxu1 %v2910_v33 }
 0x46e   :  { %2312 = vmatprep.subr.bf16.mxu0 %v2914_v37  ;;  %2344 = vmatprep.subr.bf16.mxu1 %v2916_v38 }
 0x471   :  { %2314 = vmatpush1.bf16.msra.mxu0 %v2920_v42  ;;  %2346 = vmatpush1.bf16.msra.mxu1 %v2924_v46 }
 0x472   :  { %2316 = vmatprep.subr.bf16.mxu0 %v2928_v50  ;;  %2348 = vmatprep.subr.bf16.mxu1 %v2932_v54 }
 0x475   :  { %2318 = vmatpush1.bf16.msra.mxu0 %v2936_v57  ;;  %2350 = vmatpush1.bf16.msra.mxu1 %v2940_v61 }
 0x476   :  { %2320 = vmatprep.subr.bf16.mxu0 %v2944_v2  ;;  %2352 = vmatprep.subr.bf16.mxu1 %v2948_v5 }
 0x479   :  { %2322 = vmatpush1.bf16.msra.mxu0 %v2952_v8  ;;  %2354 = vmatpush1.bf16.msra.mxu1 %v2956_v13 }
 0x47a   :  { %2324 = vmatprep.subr.bf16.mxu0 %v2960_v18  ;;  %2356 = vmatprep.subr.bf16.mxu1 %v2964_v22 }
 0x47d   :  { %2326 = vmatpush1.bf16.msra.mxu0 %v2968_v27  ;;  %2358 = vmatpush1.bf16.msra.mxu1 %v2972_v31 }
 0x47e   :  { %2328 = vmatprep.subr.bf16.mxu0 %v2976_v36  ;;  %2360 = vmatprep.subr.bf16.mxu1 %v2980_v41 }
 0x481   :  { %2330 = vmatpush1.bf16.msra.mxu0 %v2984_v45  ;;  %2362 = vmatpush1.bf16.msra.mxu1 %v2988_v49 }
 0x482   :  { %2332 = vmatprep.subr.bf16.mxu0 %v2992_v55  ;;  %2364 = vmatprep.subr.bf16.mxu1 %v2996_v59 }
 0x485   :  { %2334 = vmatpush1.bf16.msra.mxu0 %v3000_v60  ;;  %2366 = vmatpush1.bf16.msra.mxu1 %v3004_v62 }
 0x486   :  { %2368 = vmatprep.subr.bf16.mxu0 %v2887_v11  ;;  %2400 = vmatprep.subr.bf16.mxu1 %v2889_v12 }
 0x53b   :  { %v1257_v21 = vpop.f32.mrb[8].mxu0  ;;  %v1328_v39 = vpop.f32.mrb[8].mxu1 }
 0x53c   :  { %v2503_v40 = vadd.f32 %v1257_v21, %v3055_v7  ;;  %v1259_v43 = vpop.f32.mrb[9].mxu0  ;;  %v1330_v44 = vpop.f32.mrb[9].mxu1  ;;  %v2519_v52 = vadd.f32 %v1328_v39, %v3061_v28 }
 0x53d   :  { %v2504_v47 = vadd.f32 %v1259_v43, %v3057_v9  ;;  %v2520_v53 = vadd.f32 %v1330_v44, %v3064_v35 }
 0x53e   :  { %v1970_v48 = vmul.f32 -1.442695, %v2503_v40  ;;  %v1972_v56 = vmul.f32 -1.442695, %v2519_v52 }
 0x53f   :  { %v1971_v51 = vmul.f32 -1.442695, %v2504_v47 }
 0x540   :  { %2634 = vpow2.f32 %v1970_v48 }
 0x541   :  { %2636 = vpow2.f32 %v1971_v51 }
 0x542   :  { %2638 = vtanh.f32 %v2520_v53 }
 0x543   :  { %2640 = vpow2.f32 %v1972_v56 }
 0x54a   :  { %v2635_v58 = vpop.eup %2634 }
 0x54b   :  { %v1346_v0 = vadd.f32 1.0, %v2635_v58  ;;  %v2637_v3 = vpop.eup %2636 }
 0x54c   :  { %v1347_v6 = vadd.f32 1.0, %v2637_v3  ;;  %v2639_v10 = vpop.eup %2638 }
 0x54d   :  { %2642 = vrcp.f32 %v1346_v0  ;;  %v2641_v17 = vpop.eup %2640 }
 0x54e   :  { %2644 = vrcp.f32 %v1347_v6  ;;  %v1348_v30 = vadd.f32 1.0, %v2641_v17 }
 0x550   :  { %2646 = vrcp.f32 %v1348_v30 }
 0x557   :  { %v2643_v19 = vpop.eup %2642 }
 0x558   :  { %v1357_v23 = vmul.f32 %v2643_v19, %v2639_v10  ;;  %v2645_v4 = vpop.eup %2644 }
 0x559   :  { %v1356_v15 = vmul.f32 %v2645_v4, %v3201_v26 }
 0x55a   :  { %v2647_v34 = vpop.eup %2646 }
 0x55b   :  { %v3244_v32 = vadd.f32 %v1357_v23, %v1356_v15 }
 0x55d   :  { %2648 = vtanh.f32 %v3244_v32 }
 0x567   :  { %v2649_v21 = vpop.eup %2648 }
 0x568   :  { %v1360_v39 = vmul.f32 %v2649_v21, %v2647_v34 }
 0x56a   :  { %1437 = vmatmul.mubr.f32.vlgmr.msra.gmra.mrb[10].mxu0 %v1360_v39  ;;  %1508 = vmatmul.mubr.f32.vlgmr.msra.gmra.mrb[10].mxu1 %v1360_v39  ;;  %v1361_v40 = vmul.f32 %v3073_v14, %v1360_v39 }
 0x56b   :  { %2370 = vmatpush1.bf16.msra.mxu0 %v2891_v16  ;;  %2402 = vmatpush1.bf16.msra.mxu1 %v2897_v20 }
 0x56c   :  { %1362 = vadd.xlane.f32.xlu0 %v1361_v40  ;;  %2372 = vmatprep.subr.bf16.mxu0 %v2900_v24 }
 0x56d   :  { %2404 = vmatprep.subr.bf16.mxu1 %v2902_v25  ;;  %1617 = vmatprep.mubr.f32.mxu0 %v2799_v1 }
 0x56e   :  { %1688 = vmatprep.mubr.f32.mxu1 %v2799_v1 }
 0x56f   :  { %2374 = vmatpush1.bf16.msra.mxu0 %v2906_v29  ;;  %2406 = vmatpush1.bf16.msra.mxu1 %v2910_v33 }
 0x570   :  { %2376 = vmatprep.subr.bf16.mxu0 %v2914_v37  ;;  %2408 = vmatprep.subr.bf16.mxu1 %v2916_v38 }
 0x573   :  { %2378 = vmatpush1.bf16.msra.mxu0 %v2920_v42  ;;  %2410 = vmatpush1.bf16.msra.mxu1 %v2924_v46 }
 0x574   :  { %2380 = vmatprep.subr.bf16.mxu0 %v2928_v50  ;;  %2412 = vmatprep.subr.bf16.mxu1 %v2932_v54 }
 0x577   :  { %2382 = vmatpush1.bf16.msra.mxu0 %v2936_v57  ;;  %2414 = vmatpush1.bf16.msra.mxu1 %v2940_v61 }
 0x578   :  { %2384 = vmatprep.subr.bf16.mxu0 %v2944_v2  ;;  %2416 = vmatprep.subr.bf16.mxu1 %v2948_v5 }
 0x57b   :  { %2386 = vmatpush1.bf16.msra.mxu0 %v2952_v8  ;;  %2418 = vmatpush1.bf16.msra.mxu1 %v2956_v13 }
 0x57c   :  { %2388 = vmatprep.subr.bf16.mxu0 %v2960_v18  ;;  %2420 = vmatprep.subr.bf16.mxu1 %v2964_v22 }
 0x57f   :  { %2390 = vmatpush1.bf16.msra.mxu0 %v2968_v27  ;;  %2422 = vmatpush1.bf16.msra.mxu1 %v2972_v31 }
 0x580   :  { %2392 = vmatprep.subr.bf16.mxu0 %v2976_v36  ;;  %2424 = vmatprep.subr.bf16.mxu1 %v2980_v41 }
 0x583   :  { %2394 = vmatpush1.bf16.msra.mxu0 %v2984_v45  ;;  %2426 = vmatpush1.bf16.msra.mxu1 %v2988_v49 }
 0x584   :  { %2396 = vmatprep.subr.bf16.mxu0 %v2992_v55  ;;  %2428 = vmatprep.subr.bf16.mxu1 %v2996_v59 }
 0x587   :  { %2398 = vmatpush1.bf16.msra.mxu0 %v3000_v60  ;;  %2430 = vmatpush1.bf16.msra.mxu1 %v3004_v62 }
 0x588   :  { %2432 = vmatprep.subr.bf16.mxu0 %v2887_v11  ;;  %2464 = vmatprep.subr.bf16.mxu1 %v2889_v12 }
 0x63d   :  { %v1438_v26 = vpop.f32.mrb[10].mxu0  ;;  %v1509_v43 = vpop.f32.mrb[10].mxu1 }
 0x63e   :  { %v2505_v44 = vadd.f32 %v1438_v26, %v3055_v7  ;;  %v1440_v47 = vpop.f32.mrb[11].mxu0  ;;  %v1511_v48 = vpop.f32.mrb[11].mxu1  ;;  %v2521_v56 = vadd.f32 %v1509_v43, %v3061_v28 }
 0x63f   :  { %v2506_v51 = vadd.f32 %v1440_v47, %v3057_v9  ;;  %v2522_v58 = vadd.f32 %v1511_v48, %v3064_v35 }
 0x640   :  { %v1973_v52 = vmul.f32 -1.442695, %v2505_v44  ;;  %v1975_v0 = vmul.f32 -1.442695, %v2521_v56 }
 0x641   :  { %v1974_v53 = vmul.f32 -1.442695, %v2506_v51 }
 0x642   :  { %2650 = vpow2.f32 %v1973_v52 }
 0x643   :  { %2652 = vpow2.f32 %v1974_v53 }
 0x644   :  { %2654 = vtanh.f32 %v2522_v58 }
 0x645   :  { %2656 = vpow2.f32 %v1975_v0 }
 0x64c   :  { %v2651_v11 = vpop.eup %2650 }
 0x64d   :  { %v1527_v3 = vadd.f32 1.0, %v2651_v11  ;;  %v2653_v12 = vpop.eup %2652 }
 0x64e   :  { %v1528_v6 = vadd.f32 1.0, %v2653_v12  ;;  %v2655_v10 = vpop.eup %2654 }
 0x64f   :  { %2658 = vrcp.f32 %v1527_v3  ;;  %v2657_v17 = vpop.eup %2656 }
 0x650   :  { %2660 = vrcp.f32 %v1528_v6  ;;  %v1529_v30 = vadd.f32 1.0, %v2657_v17 }
 0x652   :  { %2662 = vrcp.f32 %v1529_v30 }
 0x659   :  { %v2659_v19 = vpop.eup %2658 }
 0x65a   :  { %v1538_v23 = vmul.f32 %v2659_v19, %v2655_v10  ;;  %v2661_v4 = vpop.eup %2660 }
 0x65b   :  { %v1537_v15 = vmul.f32 %v2661_v4, %v3244_v32 }
 0x65c   :  { %v2663_v21 = vpop.eup %2662 }
 0x65d   :  { %v3287_v34 = vadd.f32 %v1538_v23, %v1537_v15  ;;  %v639_v15 = vpop.xlane.xlu0 %638 }
 0x65f   :  { %2664 = vtanh.f32 %v3287_v34 }
 0x669   :  { %v2665_v39 = vpop.eup %2664 }
 0x66a   :  { %v1541_v40 = vmul.f32 %v2665_v39, %v2663_v21  ;;  %v820_v21 = vpop.xlane.xlu0 %819  ;;  %v1001_v39 = vpop.xlane.xlu1 %1000 }
 0x66c   :  { %1618 = vmatmul.mubr.f32.vlgmr.msra.gmra.mrb[12].mxu0 %v1541_v40  ;;  %1689 = vmatmul.mubr.f32.vlgmr.msra.gmra.mrb[12].mxu1 %v1541_v40  ;;  %v1542_v26 = vmul.f32 %v3073_v14, %v1541_v40 }
 0x66d   :  { %2434 = vmatpush1.bf16.msra.mxu0 %v2891_v16  ;;  %2466 = vmatpush1.bf16.msra.mxu1 %v2897_v20 }
 0x66e   :  { %1543 = vadd.xlane.f32.xlu1 %v1542_v26  ;;  %2436 = vmatprep.subr.bf16.mxu0 %v2900_v24  ;;  %v1363_v40 = vpop.xlane.xlu0 %1362  ;;  %v1182_v26 = vpop.xlane.xlu1 %1181 }
 0x66f   :  { %2468 = vmatprep.subr.bf16.mxu1 %v2902_v25  ;;  %1798 = vmatprep.mubr.f32.mxu0 %v2799_v1 }
 0x670   :  { %1869 = vmatprep.mubr.f32.mxu1 %v2799_v1 }
 0x671   :  { %2438 = vmatpush1.bf16.msra.mxu0 %v2906_v29  ;;  %2470 = vmatpush1.bf16.msra.mxu1 %v2910_v33 }
 0x672   :  { %2440 = vmatprep.subr.bf16.mxu0 %v2914_v37  ;;  %2472 = vmatprep.subr.bf16.mxu1 %v2916_v38 }
 0x675   :  { %2442 = vmatpush1.bf16.msra.mxu0 %v2920_v42  ;;  %2474 = vmatpush1.bf16.msra.mxu1 %v2924_v46 }
 0x676   :  { %2444 = vmatprep.subr.bf16.mxu0 %v2928_v50  ;;  %2476 = vmatprep.subr.bf16.mxu1 %v2932_v54 }
 0x679   :  { %2446 = vmatpush1.bf16.msra.mxu0 %v2936_v57  ;;  %2478 = vmatpush1.bf16.msra.mxu1 %v2940_v61 }
 0x67a   :  { %2448 = vmatprep.subr.bf16.mxu0 %v2944_v2  ;;  %2480 = vmatprep.subr.bf16.mxu1 %v2948_v5 }
 0x67d   :  { %2450 = vmatpush1.bf16.msra.mxu0 %v2952_v8  ;;  %2482 = vmatpush1.bf16.msra.mxu1 %v2956_v13 }
 0x67e   :  { %2452 = vmatprep.subr.bf16.mxu0 %v2960_v18  ;;  %2484 = vmatprep.subr.bf16.mxu1 %v2964_v22 }
 0x681   :  { %2454 = vmatpush1.bf16.msra.mxu0 %v2968_v27  ;;  %2486 = vmatpush1.bf16.msra.mxu1 %v2972_v31 }
 0x682   :  { %2456 = vmatprep.subr.bf16.mxu0 %v2976_v36  ;;  %2488 = vmatprep.subr.bf16.mxu1 %v2980_v41 }
 0x685   :  { %2458 = vmatpush1.bf16.msra.mxu0 %v2984_v45  ;;  %2490 = vmatpush1.bf16.msra.mxu1 %v2988_v49 }
 0x686   :  { %2460 = vmatprep.subr.bf16.mxu0 %v2992_v55  ;;  %2492 = vmatprep.subr.bf16.mxu1 %v2996_v59  ;;  %v1982_v55 = vld [vmem:[#allocation5] ss:$0 sm:$0xff]  ;;  %v2800_v59 = vmov 0  }
 0x687   :  { %2569 = vset.pattern.permute.xlu0 %v2800_v59 }
 0x689   :  { %2462 = vmatpush1.bf16.msra.mxu0 %v3000_v60  ;;  %2494 = vmatpush1.bf16.msra.mxu1 %v3004_v62 }
 0x73f   :  { %v1619_v1 = vpop.f32.mrb[12].mxu0  ;;  %v1690_v16 = vpop.f32.mrb[12].mxu1 }
 0x740   :  { %v2507_v20 = vadd.f32 %v1619_v1, %v3055_v7  ;;  %v1621_v24 = vpop.f32.mrb[13].mxu0  ;;  %v1692_v25 = vpop.f32.mrb[13].mxu1  ;;  %v2523_v38 = vadd.f32 %v1690_v16, %v3061_v28 }
 0x741   :  { %v2508_v29 = vadd.f32 %v1621_v24, %v3057_v9  ;;  %v2524_v42 = vadd.f32 %v1692_v25, %v3064_v35  ;;  %v1544_v25 = vpop.xlane.xlu1 %1543 }
 0x742   :  { %v1976_v33 = vmul.f32 -1.442695, %v2507_v20  ;;  %v1978_v46 = vmul.f32 -1.442695, %v2523_v38 }
 0x743   :  { %v1977_v37 = vmul.f32 -1.442695, %v2508_v29 }
 0x744   :  { %2666 = vpow2.f32 %v1976_v33 }
 0x745   :  { %2668 = vpow2.f32 %v1977_v37 }
 0x746   :  { %2670 = vtanh.f32 %v2524_v42 }
 0x747   :  { %2672 = vpow2.f32 %v1978_v46 }
 0x74e   :  { %v2667_v50 = vpop.eup %2666 }
 0x74f   :  { %v1708_v54 = vadd.f32 1.0, %v2667_v50  ;;  %v2669_v57 = vpop.eup %2668 }
 0x750   :  { %v1709_v61 = vadd.f32 1.0, %v2669_v57  ;;  %v2671_v2 = vpop.eup %2670 }
 0x751   :  { %2674 = vrcp.f32 %v1708_v54  ;;  %v2673_v5 = vpop.eup %2672 }
 0x752   :  { %2676 = vrcp.f32 %v1709_v61  ;;  %v1710_v22 = vadd.f32 1.0, %v2673_v5 }
 0x754   :  { %2678 = vrcp.f32 %v1710_v22 }
 0x75b   :  { %v2675_v8 = vpop.eup %2674 }
 0x75c   :  { %v1719_v13 = vmul.f32 %v2675_v8, %v2671_v2  ;;  %v2677_v18 = vpop.eup %2676 }
 0x75d   :  { %v1718_v27 = vmul.f32 %v2677_v18, %v3287_v34  ;;  %v392_v34 = vand.u32 127, %v85_v63 }
 0x75e   :  { %v2679_v36 = vpop.eup %2678 }
 0x75f   :  { %v1720_v31 = vadd.f32 %v1719_v13, %v1718_v27  ;;  %vm640_vm1 = vcmp.eq.s32.totalorder %v392_v34, 0  ;;  %vm821_vm2 = vcmp.eq.s32.totalorder %v392_v34, 1  ;;  %vm1002_vm3 = vcmp.eq.s32.totalorder %v392_v34, 2 }
 0x760   :  { %v643_v1 = vsel %vm640_vm1, %v639_v15, 0.0  ;;  %vm1183_vm4 = vcmp.eq.s32.totalorder %v392_v34, 3  ;;  %vm1364_vm5 = vcmp.eq.s32.totalorder %v392_v34, 4  ;;  %vm1545_vm6 = vcmp.eq.s32.totalorder %v392_v34, 5 }
 0x761   :  { %2680 = vtanh.f32 %v1720_v31  ;;  %v824_v16 = vsel %vm821_vm2, %v820_v21, %v643_v1  ;;  %vm1726_vm7 = vcmp.eq.s32.totalorder %v392_v34, 6  ;;  %vm1907_vm8 = vcmp.eq.s32.totalorder %v392_v34, 7 }
 0x762   :  { %v1005_v24 = vsel %vm1002_vm3, %v1001_v39, %v824_v16 }
 0x76b   :  { %v2681_v41 = vpop.eup %2680 }
 0x76c   :  { %v1722_v45 = vmul.f32 %v2681_v41, %v2679_v36 }
 0x76e   :  { %1799 = vmatmul.mubr.f32.vlgmr.msra.gmra.mrb[14].mxu0 %v1722_v45  ;;  %1870 = vmatmul.mubr.f32.vlgmr.msra.gmra.mrb[14].mxu1 %v1722_v45  ;;  %v1723_v49 = vmul.f32 %v3073_v14, %v1722_v45 }
 0x770   :  { %1724 = vadd.xlane.f32.xlu0 %v1723_v49 }
 0x786   :  { %1920 = vperm.xlu0 %2569, %v1982_v55  }
 0x7fd   :  { %v1725_v20 = vpop.xlane.xlu0 %1724 }
 0x805   :  { %v1921_v33 = vpop.permute.xlu0 %1920 }
 0x841   :  { %v1800_v60 = vpop.f32.mrb[14].mxu0  ;;  %v1871_v62 = vpop.f32.mrb[14].mxu1 }
 0x842   :  { %v2509_v32 = vadd.f32 %v1800_v60, %v3055_v7  ;;  %v1802_v43 = vpop.f32.mrb[15].mxu0  ;;  %v1873_v44 = vpop.f32.mrb[15].mxu1  ;;  %v2525_v52 = vadd.f32 %v1871_v62, %v3061_v28 }
 0x843   :  { %v2510_v47 = vadd.f32 %v1802_v43, %v3057_v9  ;;  %v2526_v53 = vadd.f32 %v1873_v44, %v3064_v35 }
 0x844   :  { %v1979_v48 = vmul.f32 -1.442695, %v2509_v32  ;;  %v1981_v56 = vmul.f32 -1.442695, %v2525_v52 }
 0x845   :  { %v1980_v51 = vmul.f32 -1.442695, %v2510_v47 }
 0x846   :  { %2682 = vpow2.f32 %v1979_v48 }
 0x847   :  { %2684 = vpow2.f32 %v1980_v51 }
 0x848   :  { %2686 = vtanh.f32 %v2526_v53 }
 0x849   :  { %2688 = vpow2.f32 %v1981_v56 }
 0x850   :  { %v2683_v58 = vpop.eup %2682 }
 0x851   :  { %v1889_v0 = vadd.f32 1.0, %v2683_v58  ;;  %v2685_v11 = vpop.eup %2684 }
 0x852   :  { %v1890_v7 = vadd.f32 1.0, %v2685_v11  ;;  %v2687_v3 = vpop.eup %2686 }
 0x853   :  { %2690 = vrcp.f32 %v1889_v0  ;;  %v2689_v12 = vpop.eup %2688 }
 0x854   :  { %2692 = vrcp.f32 %v1890_v7  ;;  %v1891_v17 = vadd.f32 1.0, %v2689_v12 }
 0x856   :  { %2694 = vrcp.f32 %v1891_v17 }
 0x85d   :  { %v2691_v9 = vpop.eup %2690 }
 0x85e   :  { %v1900_v6 = vmul.f32 %v2691_v9, %v2687_v3  ;;  %v2693_v10 = vpop.eup %2692 }
 0x85f   :  { %v1899_v19 = vmul.f32 %v2693_v10, %v1720_v31 }
 0x860   :  { %v2695_v28 = vpop.eup %2694 }
 0x861   :  { %v1901_v23 = vadd.f32 %v1900_v6, %v1899_v19 }
 0x863   :  { %2696 = vtanh.f32 %v1901_v23 }
 0x86d   :  { %v2697_v35 = vpop.eup %2696 }
 0x86e   :  { %v1903_v4 = vmul.f32 %v2697_v35, %v2695_v28 }
 0x870   :  { %v1904_v30 = vmul.f32 %v3073_v14, %v1903_v4  ;;  %v1186_v14 = vsel %vm1183_vm4, %v1182_v26, %v1005_v24 }
 0x871   :  { %v1367_v29 = vsel %vm1364_vm5, %v1363_v40, %v1186_v14 }
 0x872   :  { %1905 = vadd.xlane.f32.xlu1 %v1904_v30  ;;  %v1548_v63 = vsel %vm1545_vm6, %v1544_v25, %v1367_v29 }
 0x873   :  { %v1729_v37 = vsel %vm1726_vm7, %v1725_v20, %v1548_v63 }
 0x8ff   :  { %v1906_v38 = vpop.xlane.xlu1 %1905 }
 0x900   :  { %v1910_v42 = vsel %vm1907_vm8, %v1906_v38, %v1729_v37 }
 0x901   :  { %v1923_v46 = vadd.f32 %v1921_v33, %v1910_v42 }
 0x903   :  { %1924 = vst.msk [vmem:[#allocation12] sm:$0xff] %vm105_vm0, %v1923_v46 }
 0x904   :  { %2775 = shalt.err (!%p2772_p0)
}
 0x905   :  { %s2776_s17 = scalar_lea.hbm %s3354_s6, 128 }
 0x906   :  { %p2777_p1 = scmp.ne.s32.totalorder %s3354_s6, %s2776_s17  ;;  %p2780_p2 = scmp.lt.u32.totalorder %s2776_s17, %s3354_s6 }
 0x908   :  { %p2782_p3 = pnand %p2780_p2, %p2777_p1 }
 0x90a   :  { %2785 = shalt.err (!%p2782_p3)
}
 0x90b   :  { %1934 = dma.vmem_to_hbm [thread:$0]  %s1932_s13, 128, %s3354_s6, [#allocation8]  }
 0x90c   :  { %2790 = dma.done.wait [#allocation8], 128  }
 0x90d   :  { %2791 = vsyncadd [#allocation8], 4294967168 }
 0x90e   :  { %1938 = vsyncpa [#allocation7], 1 }
 0x90f   :  { %1939 = vsyncpa [#allocation10], 1 }
 0x910   :  { %1940 = vsyncpa [#allocation8], 1 }

</bundles_post_ra>
